<compile_context>
chip_gen: v7x
topology: tpu7x:2x2x1
jax: 0.10.0
libtpu: 0.0.40
codegen_flags: <defaults>
</compile_context>

<pallas_src>
import functools

import jax
import jax.numpy as jnp
from jax.experimental import pallas as pl
from jax.experimental.pallas import tpu as pltpu


def _make_divisible(v, divisor=8, min_value=None):
    if min_value is None:
        min_value = divisor
    new_v = max(min_value, int(v + divisor / 2) // divisor * divisor)
    if new_v < 0.9 * v:
        new_v += divisor
    return new_v


def _sigmoid(z):
    # exp + approximate reciprocal -> both land in the EUP slot; no VALU divide.
    e = jnp.exp(-jnp.abs(z))
    s = pl.reciprocal(1.0 + e, approx=True)
    return jnp.where(z >= 0, s, 1.0 - s)


def _silu(z):
    return z * _sigmoid(z)


def _decmbconv_kernel(x_ref, xtop_ref, xbot_ref, cmask_ref,
                      gamma_ref, beta_ref, wexp_ref, bexp_ref,
                      wdw_ref, bdw_ref, wse1t_ref, bse1_ref,
                      wse2_ref, bse2_ref, wproj_ref, bproj_ref,
                      o_ref, se_ref,
                      *, W, band_rows, use_res, mxu_dtype, inv_hw):
    p = pl.program_id(1)                    # 0: SE-pool pass, 1: output pass
    b = pl.program_id(2)                    # row-band index
    nb = pl.num_programs(2)

    brw = band_rows * W                     # band extent on the lane axis
    buf = brw + 2 * W                       # band + 1-row halo on each side

    # ---- assemble the halo'd band slab: channels on sublanes, space on lanes ----
    x = jnp.concatenate([xtop_ref[...], x_ref[...], xbot_ref[...]],
                        axis=1).astype(jnp.float32)                 # (C, buf)

    # ---- inverse GDN:  y = x * sqrt(beta + gamma @ x^2) ----
    xsq = (x * x).astype(mxu_dtype)
    norm = jnp.dot(gamma_ref[...], xsq, preferred_element_type=jnp.float32)
    norm = jnp.maximum(norm + beta_ref[...], 1e-12)   # guard the sqrt (ref would NaN)
    y = x * jnp.sqrt(norm)                                          # (C, buf)

    # ---- 1x1 ConvTranspose2d (expand) + SiLU ----
    h1 = jnp.dot(wexp_ref[...], y.astype(mxu_dtype),
                 preferred_element_type=jnp.float32) + bexp_ref[...]
    h1 = _silu(h1)                                                  # (Cexp, buf)

    # Halo rows outside the image must act as zero padding for the depthwise conv;
    # their x rows are zero but SiLU(bias) is not, so zero the h1 halo rows here.
    lane = jax.lax.broadcasted_iota(jnp.int32, (1, buf), 1)
    pad = jnp.logical_or(jnp.logical_and(b == 0, lane < W),
                         jnp.logical_and(b == nb - 1, lane >= buf - W))
    h1 = jnp.where(pad, 0.0, h1)

    # ---- depthwise 3x3 ConvTranspose2d (stride=1, pad=1) + SiLU ----
    # Correlation with the flipped taps; 8 XLU rolls of the flat slab.  The two
    # column-shifted copies carry their column mask once (shared by all row offsets);
    # row boundaries are already handled by the zeroed halo rows above.
    wdw = wdw_ref[...]                                              # (Cexp, 9)
    ml = cmask_ref[0:1, :]                                          # col-1 valid
    mr = cmask_ref[1:2, :]                                          # col+1 valid
    hL = ml * pltpu.roll(h1, 1, axis=1)                             # value at (y, x-1)
    hR = mr * pltpu.roll(h1, buf - 1, axis=1)                       # value at (y, x+1)
    up = lambda v: pltpu.roll(v, W, axis=1)                         # value at (y-1, .)
    dn = lambda v: pltpu.roll(v, buf - W, axis=1)                   # value at (y+1, .)
    acc = h1 * wdw[:, 4:5]                                          # centre tap init
    acc = acc + hL * wdw[:, 3:4] + hR * wdw[:, 5:6]
    acc = acc + up(hL) * wdw[:, 0:1] + up(h1) * wdw[:, 1:2] + up(hR) * wdw[:, 2:3]
    acc = acc + dn(hL) * wdw[:, 6:7] + dn(h1) * wdw[:, 7:8] + dn(hR) * wdw[:, 8:9]
    h2 = _silu(acc[:, W:W + brw] + bdw_ref[...])                    # (Cexp, brw)

    # ---- pass 0: accumulate the SE global-average-pool across bands ----
    @pl.when(jnp.logical_and(p == 0, b == 0))
    def _():
        se_ref[...] = jnp.zeros_like(se_ref)

    @pl.when(p == 0)
    def _():
        se_ref[...] += jnp.sum(h2, axis=1, keepdims=True)

    # ---- pass 1: finish SE once, then gate / project / residual / store ----
    @pl.when(jnp.logical_and(p == 1, b == 0))
    def _():
        pooled = se_ref[...] * inv_hw                               # (Cexp, 1)
        s1 = _silu(jnp.sum(wse1t_ref[...] * pooled, axis=0, keepdims=True)
                   + bse1_ref[...])                                 # (1, Csq) VPU/XLU
        se_ref[...] = _sigmoid(jnp.sum(wse2_ref[...] * s1, axis=1, keepdims=True)
                               + bse2_ref[...])                     # (Cexp, 1) gate

    @pl.when(p == 1)
    def _():
        h3 = h2 * se_ref[...]
        out = jnp.dot(wproj_ref[...], h3.astype(mxu_dtype),
                      preferred_element_type=jnp.float32) + bproj_ref[...]
        if use_res:                                 # residual uses the GDN output
            out = out + y[:, W:W + brw]
        o_ref[...] = out.astype(o_ref.dtype)        # lane-dense, unmasked store


def _choose_band_rows(H, W, c_exp, budget_bytes):
    """Largest divisor of H whose per-band f32 working set fits `budget_bytes`."""
    per_row = 12 * c_exp * W * 4          # ~12 live Cexp slabs over the halo'd band
    divisors = [d for d in range(1, H + 1) if H % d == 0]
    fits = [d for d in divisors if (d + 2) * per_row <= budget_bytes] or [divisors[0]]
    lane_dense = [d for d in fits if (d * W) % 128 == 0]
    return max(lane_dense) if lane_dense else max(fits)


def decmbconv_forward(x_nchw, params, use_res, *, band_rows=None,
                      mxu_dtype=jnp.bfloat16, out_dtype=None,
                      band_vmem_budget_bytes=8 << 20):
    """DecMBConv forward.  `params` are in PyTorch-natural layouts.

    x may be f32 or bf16 (bf16 I/O halves activation HBM traffic; accumulation and
    all elementwise math stay f32 in-kernel).  Derate `band_vmem_budget_bytes` on
    v7x (64 MiB VMEM/TC); it can be raised on v5e/v6e (128 MiB).
    """
    (gdn_gamma, gdn_beta, w_expand, b_expand, w_dw, b_dw,
     w_se1, b_se1, w_se2, b_se2, w_proj, b_proj) = params
    N, C, H, W = x_nchw.shape
    HW = H * W
    Cexp = w_expand.shape[1]
    Cout = w_proj.shape[1]
    Csq = w_se1.shape[0]
    out_dtype = out_dtype or x_nchw.dtype
    if use_res:
        assert Cout == C, "residual requires matching channel counts"

    if band_rows is None:
        band_rows = _choose_band_rows(H, W, Cexp, band_vmem_budget_bytes)
    # TODO(synk): ragged last band (H % band_rows != 0) not implemented; pick a divisor of H.
    assert H % band_rows == 0, "band_rows must divide H"
    nb = H // band_rows
    brw = band_rows * W
    buf = brw + 2 * W

    f32 = jnp.float32
    # NCHW -> (N, C, H*W) is a free reshape (row-major); no transpose / relayout pass.
    x = x_nchw.reshape(N, C, HW)

    # 1-row halo slabs: x_top[n, b] = image row b*band_rows - 1 (zeros for b == 0),
    #                   x_bot[n, b] = image row (b+1)*band_rows (zeros for b == nb-1).
    zrow = jnp.zeros((N, C, 1, W), x_nchw.dtype)
    top = jnp.concatenate(
        [zrow, x_nchw[:, :, band_rows - 1::band_rows, :][:, :, :nb - 1, :]], axis=2)
    bot = jnp.concatenate(
        [x_nchw[:, :, band_rows::band_rows, :], zrow], axis=2)
    x_top = jnp.transpose(top, (0, 2, 1, 3))                   # (N, nb, C, W)
    x_bot = jnp.transpose(bot, (0, 2, 1, 3))                   # (N, nb, C, W)

    # Column-validity masks for the depthwise taps, precomputed once on the host
    # (avoids an integer div/mod on the VPU for non-power-of-two W).  Row 0 =
    # "x-1 valid", row 1 = "x+1 valid"; the pattern repeats every W lanes.
    col = jnp.arange(buf) % W
    cmask = jnp.stack([(col >= 1), (col <= W - 2)]).astype(f32)  # (2, buf)

    gamma = gdn_gamma.astype(mxu_dtype)                        # (C, C)   [out, in]
    beta = gdn_beta.reshape(C, 1).astype(f32)
    wexp_t = jnp.transpose(w_expand).astype(mxu_dtype)         # (Cexp, C)
    bexp = b_expand.reshape(Cexp, 1).astype(f32)
    # transposed conv == correlation with the spatially flipped kernel (tap-minor).
    wdw9 = jnp.flip(w_dw[:, 0, :, :], axis=(1, 2)).reshape(Cexp, 9).astype(f32)
    bdw = b_dw.reshape(Cexp, 1).astype(f32)
    wse1_t = jnp.transpose(w_se1).astype(f32)                  # (Cexp, Csq)
    bse1 = b_se1.reshape(1, Csq).astype(f32)
    wse2 = w_se2.astype(f32)                                   # (Cexp, Csq)
    bse2 = b_se2.reshape(Cexp, 1).astype(f32)
    wproj_t = jnp.transpose(w_proj).astype(mxu_dtype)          # (Cout, Cexp)
    bproj = b_proj.reshape(Cout, 1).astype(f32)

    wlist = [gamma, beta, wexp_t, bexp, wdw9, bdw,
             wse1_t, bse1, wse2, bse2, wproj_t, bproj]
    const_map = lambda n, p, b: (0, 0)
    # NOTE: pipeline_mode=pl.Buffered(1) on these constant-index inputs would drop the
    # unused second DMA buffer on v7x; skipped here because the weights are tiny.
    wspecs = [pl.BlockSpec(w.shape, const_map) for w in wlist]

    kernel = functools.partial(_decmbconv_kernel, W=W, band_rows=band_rows,
                               use_res=use_res, mxu_dtype=mxu_dtype,
                               inv_hw=1.0 / HW)

    # advisory cost estimate (two sweeps over every band)
    hw_buf = nb * buf
    flops = N * (2 * (2 * hw_buf * (C * C + C * Cexp) + 24 * hw_buf * Cexp)
                 + 2 * HW * Cexp * Cout + 8 * HW * Cexp + 4 * HW * C)
    transcendentals = N * (4 * hw_buf * Cexp + 2 * hw_buf * C)
    in_item = x_nchw.dtype.itemsize
    weight_bytes = sum(int(w.size) * w.dtype.itemsize for w in wlist)
    bytes_accessed = int(2 * N * C * HW * in_item + 4 * N * nb * C * W * in_item
                         + N * Cout * HW * jnp.dtype(out_dtype).itemsize
                         + weight_bytes)

    # Scoped-VMEM sizing: double-buffered in/out band blocks plus ~12 live Cexp slabs
    # of kernel temporaries; keep the limit well under v7x's 64 MiB/TC and above
    # v5e's 16 MiB default.
    band_bytes = 4 * (2 * (C + Cout) * brw + 4 * C * W + 12 * Cexp * buf) + weight_bytes
    vmem_limit_bytes = int(min(48 << 20, max(32 << 20, 2 * band_bytes)))

    out = pl.pallas_call(
        kernel,
        out_shape=jax.ShapeDtypeStruct((N, Cout, HW), out_dtype),
        grid_spec=pltpu.PrefetchScalarGridSpec(
            num_scalar_prefetch=0,
            # (image, pass, band): pass 0 accumulates the SE pool, pass 1 writes out.
            grid=(N, 2, nb),
            in_specs=[
                pl.BlockSpec((None, C, brw), lambda n, p, b: (n, 0, b)),
                pl.BlockSpec((None, None, C, W), lambda n, p, b: (n, b, 0, 0)),
                pl.BlockSpec((None, None, C, W), lambda n, p, b: (n, b, 0, 0)),
                pl.BlockSpec(cmask.shape, const_map),
            ] + wspecs,
            # park on band 0 during pass 0 so nothing is written back until pass 1.
            out_specs=pl.BlockSpec((None, Cout, brw), lambda n, p, b: (n, 0, b * p)),
            scratch_shapes=[pltpu.VMEM((Cexp, 1), jnp.float32)]),
        compiler_params=pltpu.CompilerParams(
            # TODO(synk): on v7x consider pltpu.CORE_PARALLEL on the image axis.
            dimension_semantics=("parallel", "arbitrary", "arbitrary"),
            vmem_limit_bytes=vmem_limit_bytes),
        cost_estimate=pl.CostEstimate(flops=int(flops),
                                      transcendentals=int(transcendentals),
                                      bytes_accessed=bytes_accessed),
    )(x, x_top, x_bot, cmask, *wlist)

    return out.reshape(N, Cout, H, W)


def _reference_forward(x, gdn_gamma, gdn_beta, w_expand, b_expand,
                       w_dw, b_dw, w_se1, b_se1, w_se2, b_se2,
                       w_proj, b_proj, use_res):
    """Pure-JAX reference reproducing the PyTorch forward semantics (NCHW, f32)."""
    N, C, H, W = x.shape
    norm = jnp.einsum('oj,njhw->nohw', gdn_gamma, x * x) + gdn_beta[None, :, None, None]
    y = x * jnp.sqrt(norm)                                          # inverse GDN
    h1 = jnp.einsum('io,nihw->nohw', w_expand, y) + b_expand[None, :, None, None]
    h1 = h1 * jax.nn.sigmoid(h1)
    wdw_eff = jnp.flip(w_dw[:, 0, :, :], axis=(1, 2))               # (Cexp, 3, 3)
    padded = jnp.pad(h1, ((0, 0), (0, 0), (1, 1), (1, 1)))
    h2 = jnp.zeros_like(h1)
    for dy in range(3):
        for dx in range(3):
            h2 = h2 + padded[:, :, dy:dy + H, dx:dx + W] * wdw_eff[None, :, dy, dx, None, None]
    h2 = h2 + b_dw[None, :, None, None]
    h2 = h2 * jax.nn.sigmoid(h2)
    pooled = jnp.mean(h2, axis=(2, 3))
    s1 = pooled @ w_se1.T + b_se1
    s1 = s1 * jax.nn.sigmoid(s1)
    s2 = jax.nn.sigmoid(s1 @ w_se2.T + b_se2)
    h3 = h2 * s2[:, :, None, None]
    out = jnp.einsum('io,nihw->nohw', w_proj, h3) + b_proj[None, :, None, None]
    if use_res:
        out = out + y
    return out


if __name__ == "__main__":
    # MBConvConfig(expand_ratio=2.0, kernel=3, stride=1, input_channels=8,
    #              out_channels=8, num_layers=1)
    expand_ratio, ksize, stride = 2.0, 3, 1
    Cin, Cout_cfg = 8, 8
    N, H, W = 2, 16, 16
    Cexp = _make_divisible(Cin * expand_ratio, 8)      # = 16 (expand branch present)
    Csq = max(1, Cin // 4)                             # = 2
    use_res = (stride == 1 and Cin == Cout_cfg)        # True
    # TODO(synk): stride=2 transposed-conv upsampling (output_padding=1) not implemented.
    # TODO(synk): expand_ratio=1 (no 1x1 expand conv) variant not implemented.
    # Note: DecMBConv constructs self.stochastic_depth but never applies it in forward().

    key = jax.random.PRNGKey(0)
    ks = jax.random.split(key, 12)
    scale = 0.1

    # GDN(inverse=True) parameters (kept positive, as after the non-negative reparam).
    gdn_gamma = 0.1 * jnp.eye(Cin) + 0.01 * jnp.abs(jax.random.normal(ks[0], (Cin, Cin)))
    gdn_beta = jnp.ones((Cin,), jnp.float32)
    # ConvTranspose2d(Cin, Cexp, 1): weight (Cin, Cexp, 1, 1) -> (Cin, Cexp)
    w_expand = jax.random.normal(ks[1], (Cin, Cexp)) * scale
    b_expand = jax.random.normal(ks[2], (Cexp,)) * scale
    # depthwise ConvTranspose2d(Cexp, Cexp, 3, groups=Cexp): weight (Cexp, 1, 3, 3)
    w_dw = jax.random.normal(ks[3], (Cexp, 1, 3, 3)) * scale
    b_dw = jax.random.normal(ks[4], (Cexp,)) * scale
    # SqueezeExcitation fc1/fc2 are 1x1 Conv2d: weights (out, in)
    w_se1 = jax.random.normal(ks[5], (Csq, Cexp)) * scale
    b_se1 = jax.random.normal(ks[6], (Csq,)) * scale
    w_se2 = jax.random.normal(ks[7], (Cexp, Csq)) * scale
    b_se2 = jax.random.normal(ks[8], (Cexp,)) * scale
    # ConvTranspose2d(Cexp, Cout, 1): weight (Cexp, Cout, 1, 1) -> (Cexp, Cout)
    w_proj = jax.random.normal(ks[9], (Cexp, Cout_cfg)) * scale
    b_proj = jax.random.normal(ks[10], (Cout_cfg,)) * scale

    params = (gdn_gamma, gdn_beta, w_expand, b_expand, w_dw, b_dw,
              w_se1, b_se1, w_se2, b_se2, w_proj, b_proj)
    params = jax.tree.map(lambda a: a.astype(jnp.float32), params)

    x = jax.random.normal(ks[11], (N, Cin, H, W), jnp.float32)

    # band_rows=8 -> 2 row bands per image: exercises the halo handling and the
    # two-pass SE machinery (band*W = 128 keeps the output store lane-dense).
    out = decmbconv_forward(x, params, use_res, band_rows=8)
    out = jax.block_until_ready(out)
    assert out.shape == (N, Cout_cfg, H, W)

    ref = _reference_forward(x, *params, use_res)
    err = float(jnp.max(jnp.abs(out - ref)))
    # MXU operands are bf16 (f32 accumulation); tolerance sized for bf16 rounding.
    if not err < 2e-2:
        raise AssertionError(f"mismatch vs reference: max abs err = {err}")

    print("KERNEL_OK")
</pallas_src>

<mosaic_0001>
module attributes {stable_mosaic.version = 11 : i64} {
  func.func @_decmbconv_kernel(%arg0: i32, %arg1: i32, %arg2: i32, %arg3: memref<1x8x128xf32, #tpu.memory_space<vmem>>, %arg4: memref<1x1x8x16xf32, #tpu.memory_space<vmem>>, %arg5: memref<1x1x8x16xf32, #tpu.memory_space<vmem>>, %arg6: memref<2x160xf32, #tpu.memory_space<vmem>>, %arg7: memref<8x8xbf16, #tpu.memory_space<vmem>>, %arg8: memref<8x1xf32, #tpu.memory_space<vmem>>, %arg9: memref<16x8xbf16, #tpu.memory_space<vmem>>, %arg10: memref<16x1xf32, #tpu.memory_space<vmem>>, %arg11: memref<16x9xf32, #tpu.memory_space<vmem>>, %arg12: memref<16x1xf32, #tpu.memory_space<vmem>>, %arg13: memref<16x2xf32, #tpu.memory_space<vmem>>, %arg14: memref<1x2xf32, #tpu.memory_space<vmem>>, %arg15: memref<16x2xf32, #tpu.memory_space<vmem>>, %arg16: memref<16x1xf32, #tpu.memory_space<vmem>>, %arg17: memref<8x16xbf16, #tpu.memory_space<vmem>>, %arg18: memref<8x1xf32, #tpu.memory_space<vmem>>, %arg19: memref<1x8x128xf32, #tpu.memory_space<vmem>>, %arg20: memref<16x1xf32, #tpu.memory_space<vmem>>) attributes {dimension_semantics = [#tpu.dimension_semantics<parallel>, #tpu.dimension_semantics<arbitrary>, #tpu.dimension_semantics<arbitrary>], iteration_bounds = array<i64: 2, 2, 2>, scalar_prefetch = 0 : i64, scratch_operands = 1 : i64, tpu.core_type = #tpu.core_type<tc>, window_params = [{transform_indices = @transform_0, window_bounds = array<i64: 1, 8, 128>}, {transform_indices = @transform_1, window_bounds = array<i64: 1, 1, 8, 16>}, {transform_indices = @transform_2, window_bounds = array<i64: 1, 1, 8, 16>}, {pipeline_mode = #tpu.pipeline_mode<synchronous>, transform_indices = @transform_3, window_bounds = array<i64: 2, 160>}, {pipeline_mode = #tpu.pipeline_mode<synchronous>, transform_indices = @transform_4, window_bounds = array<i64: 8, 8>}, {pipeline_mode = #tpu.pipeline_mode<synchronous>, transform_indices = @transform_5, window_bounds = array<i64: 8, 1>}, {pipeline_mode = #tpu.pipeline_mode<synchronous>, transform_indices = @transform_6, window_bounds = array<i64: 16, 8>}, {pipeline_mode = #tpu.pipeline_mode<synchronous>, transform_indices = @transform_7, window_bounds = array<i64: 16, 1>}, {pipeline_mode = #tpu.pipeline_mode<synchronous>, transform_indices = @transform_8, window_bounds = array<i64: 16, 9>}, {pipeline_mode = #tpu.pipeline_mode<synchronous>, transform_indices = @transform_9, window_bounds = array<i64: 16, 1>}, {pipeline_mode = #tpu.pipeline_mode<synchronous>, transform_indices = @transform_10, window_bounds = array<i64: 16, 2>}, {pipeline_mode = #tpu.pipeline_mode<synchronous>, transform_indices = @transform_11, window_bounds = array<i64: 1, 2>}, {pipeline_mode = #tpu.pipeline_mode<synchronous>, transform_indices = @transform_12, window_bounds = array<i64: 16, 2>}, {pipeline_mode = #tpu.pipeline_mode<synchronous>, transform_indices = @transform_13, window_bounds = array<i64: 16, 1>}, {pipeline_mode = #tpu.pipeline_mode<synchronous>, transform_indices = @transform_14, window_bounds = array<i64: 8, 16>}, {pipeline_mode = #tpu.pipeline_mode<synchronous>, transform_indices = @transform_15, window_bounds = array<i64: 8, 1>}, {transform_indices = @transform_16, window_bounds = array<i64: 1, 8, 128>}]} {
    %c0 = arith.constant 0 : index
    %c0_0 = arith.constant 0 : index
    %c0_1 = arith.constant 0 : index
    %c0_2 = arith.constant 0 : index
    %0 = vector.load %arg4[%c0, %c0_0, %c0_1, %c0_2] : memref<1x1x8x16xf32, #tpu.memory_space<vmem>>, vector<1x1x8x16xf32>
    %1 = vector.shape_cast %0 : vector<1x1x8x16xf32> to vector<8x16xf32>
    %c0_3 = arith.constant 0 : index
    %c0_4 = arith.constant 0 : index
    %c0_5 = arith.constant 0 : index
    %2 = vector.load %arg3[%c0_3, %c0_4, %c0_5] : memref<1x8x128xf32, #tpu.memory_space<vmem>>, vector<1x8x128xf32>
    %3 = vector.shape_cast %2 : vector<1x8x128xf32> to vector<8x128xf32>
    %c0_6 = arith.constant 0 : index
    %c0_7 = arith.constant 0 : index
    %c0_8 = arith.constant 0 : index
    %c0_9 = arith.constant 0 : index
    %4 = vector.load %arg5[%c0_6, %c0_7, %c0_8, %c0_9] : memref<1x1x8x16xf32, #tpu.memory_space<vmem>>, vector<1x1x8x16xf32>
    %5 = vector.shape_cast %4 : vector<1x1x8x16xf32> to vector<8x16xf32>
    %6 = tpu.concatenate %1, %3, %5 in 1 : vector<8x16xf32>, vector<8x128xf32>, vector<8x16xf32> -> vector<8x160xf32>
    %7 = arith.mulf %6, %6 : vector<8x160xf32>
    %8 = arith.truncf %7 : vector<8x160xf32> to vector<8x160xbf16>
    %c0_10 = arith.constant 0 : index
    %c0_11 = arith.constant 0 : index
    %9 = vector.load %arg7[%c0_10, %c0_11] : memref<8x8xbf16, #tpu.memory_space<vmem>>, vector<8x8xbf16>
    %cst = arith.constant dense<0.000000e+00> : vector<8x160xf32>
    %10 = tpu.matmul %9, %8, %cst {dimension_numbers = #tpu.dot_dimension_numbers<[1], [0], [0], [1], [0, 0, 1, 1], [], []>} : vector<8x8xbf16>, vector<8x160xbf16>, vector<8x160xf32> -> vector<8x160xf32>
    %c0_12 = arith.constant 0 : index
    %c0_13 = arith.constant 0 : index
    %11 = vector.load %arg8[%c0_12, %c0_13] : memref<8x1xf32, #tpu.memory_space<vmem>>, vector<8x1xf32>
    %12 = vector.broadcast %11 : vector<8x1xf32> to vector<8x160xf32>
    %13 = arith.addf %10, %12 : vector<8x160xf32>
    %cst_14 = arith.constant 9.99999996E-13 : f32
    %14 = vector.broadcast %cst_14 : f32 to vector<8x160xf32>
    %15 = arith.maximumf %13, %14 : vector<8x160xf32>
    %16 = math.sqrt %15 : vector<8x160xf32>
    %17 = arith.mulf %6, %16 : vector<8x160xf32>
    %c0_15 = arith.constant 0 : index
    %c0_16 = arith.constant 0 : index
    %18 = vector.load %arg9[%c0_15, %c0_16] : memref<16x8xbf16, #tpu.memory_space<vmem>>, vector<16x8xbf16>
    %19 = arith.truncf %17 : vector<8x160xf32> to vector<8x160xbf16>
    %cst_17 = arith.constant dense<0.000000e+00> : vector<16x160xf32>
    %20 = tpu.matmul %18, %19, %cst_17 {dimension_numbers = #tpu.dot_dimension_numbers<[1], [0], [0], [1], [0, 0, 1, 1], [], []>} : vector<16x8xbf16>, vector<8x160xbf16>, vector<16x160xf32> -> vector<16x160xf32>
    %c0_18 = arith.constant 0 : index
    %c0_19 = arith.constant 0 : index
    %21 = vector.load %arg10[%c0_18, %c0_19] : memref<16x1xf32, #tpu.memory_space<vmem>>, vector<16x1xf32>
    %22 = vector.broadcast %21 : vector<16x1xf32> to vector<16x160xf32>
    %23 = arith.addf %20, %22 : vector<16x160xf32>
    %24 = math.absf %23 : vector<16x160xf32>
    %cst_20 = arith.constant 0.000000e+00 : f32
    %25 = vector.broadcast %cst_20 : f32 to vector<16x160xf32>
    %26 = arith.subf %25, %24 : vector<16x160xf32>
    %27 = math.exp %26 : vector<16x160xf32>
    %cst_21 = arith.constant 1.000000e+00 : f32
    %28 = vector.broadcast %cst_21 : f32 to vector<16x160xf32>
    %29 = arith.addf %28, %27 : vector<16x160xf32>
    %30 = tpu.reciprocal %29 {approx = true} : vector<16x160xf32> -> vector<16x160xf32>
    %cst_22 = arith.constant 0.000000e+00 : f32
    %31 = vector.broadcast %cst_22 : f32 to vector<16x160xf32>
    %32 = arith.cmpf oge, %23, %31 : vector<16x160xf32>
    %cst_23 = arith.constant 1.000000e+00 : f32
    %33 = vector.broadcast %cst_23 : f32 to vector<16x160xf32>
    %34 = arith.subf %33, %30 : vector<16x160xf32>
    %35 = arith.select %32, %30, %34 : vector<16x160xi1>, vector<16x160xf32>
    %36 = arith.mulf %23, %35 : vector<16x160xf32>
    %37 = tpu.iota {dimensions = array<i32: 1>} : vector<1x160xi32>
    %c0_i32 = arith.constant 0 : i32
    %38 = arith.cmpi eq, %arg2, %c0_i32 : i32
    %c16_i32 = arith.constant 16 : i32
    %39 = vector.broadcast %c16_i32 : i32 to vector<1x160xi32>
    %40 = arith.cmpi slt, %37, %39 : vector<1x160xi32>
    %41 = vector.broadcast %38 : i1 to vector<1x160xi1>
    %42 = arith.andi %41, %40 : vector<1x160xi1>
    %c1_i32 = arith.constant 1 : i32
    %43 = arith.cmpi eq, %arg2, %c1_i32 : i32
    %c144_i32 = arith.constant 144 : i32
    %44 = vector.broadcast %c144_i32 : i32 to vector<1x160xi32>
    %45 = arith.cmpi sge, %37, %44 : vector<1x160xi32>
    %46 = vector.broadcast %43 : i1 to vector<1x160xi1>
    %47 = arith.andi %46, %45 : vector<1x160xi1>
    %48 = arith.ori %42, %47 : vector<1x160xi1>
    %cst_24 = arith.constant 0.000000e+00 : f32
    %49 = vector.shape_cast %48 : vector<1x160xi1> to vector<1x160xi1>
    %50 = vector.broadcast %49 : vector<1x160xi1> to vector<16x160xi1>
    %51 = vector.broadcast %cst_24 : f32 to vector<16x160xf32>
    %52 = arith.select %50, %51, %36 : vector<16x160xi1>, vector<16x160xf32>
    %c0_25 = arith.constant 0 : index
    %c0_26 = arith.constant 0 : index
    %53 = vector.load %arg11[%c0_25, %c0_26] : memref<16x9xf32, #tpu.memory_space<vmem>>, vector<16x9xf32>
    %c0_27 = arith.constant 0 : index
    %c0_28 = arith.constant 0 : index
    %54 = vector.load %arg6[%c0_27, %c0_28] : memref<2x160xf32, #tpu.memory_space<vmem>>, vector<1x160xf32>
    %c1 = arith.constant 1 : index
    %c0_29 = arith.constant 0 : index
    %55 = vector.load %arg6[%c1, %c0_29] : memref<2x160xf32, #tpu.memory_space<vmem>>, vector<1x160xf32>
    %c1_i32_30 = arith.constant 1 : i32
    %56 = tpu.dynamic_rotate %52 by %c1_i32_30 dim 1 : vector<16x160xf32>, i32 -> vector<16x160xf32>
    %57 = vector.broadcast %54 : vector<1x160xf32> to vector<16x160xf32>
    %58 = arith.mulf %57, %56 : vector<16x160xf32>
    %c159_i32 = arith.constant 159 : i32
    %59 = tpu.dynamic_rotate %52 by %c159_i32 dim 1 : vector<16x160xf32>, i32 -> vector<16x160xf32>
    %60 = vector.broadcast %55 : vector<1x160xf32> to vector<16x160xf32>
    %61 = arith.mulf %60, %59 : vector<16x160xf32>
    %62 = vector.extract_strided_slice %53 {offsets = [0, 4], sizes = [16, 1], strides = [1, 1]} : vector<16x9xf32> to vector<16x1xf32>
    %63 = vector.broadcast %62 : vector<16x1xf32> to vector<16x160xf32>
    %64 = arith.mulf %52, %63 : vector<16x160xf32>
    %65 = vector.extract_strided_slice %53 {offsets = [0, 3], sizes = [16, 1], strides = [1, 1]} : vector<16x9xf32> to vector<16x1xf32>
    %66 = vector.broadcast %65 : vector<16x1xf32> to vector<16x160xf32>
    %67 = arith.mulf %58, %66 : vector<16x160xf32>
    %68 = arith.addf %64, %67 : vector<16x160xf32>
    %69 = vector.extract_strided_slice %53 {offsets = [0, 5], sizes = [16, 1], strides = [1, 1]} : vector<16x9xf32> to vector<16x1xf32>
    %70 = vector.broadcast %69 : vector<16x1xf32> to vector<16x160xf32>
    %71 = arith.mulf %61, %70 : vector<16x160xf32>
    %72 = arith.addf %68, %71 : vector<16x160xf32>
    %c16_i32_31 = arith.constant 16 : i32
    %73 = tpu.dynamic_rotate %58 by %c16_i32_31 dim 1 : vector<16x160xf32>, i32 -> vector<16x160xf32>
    %74 = vector.extract_strided_slice %53 {offsets = [0, 0], sizes = [16, 1], strides = [1, 1]} : vector<16x9xf32> to vector<16x1xf32>
    %75 = vector.broadcast %74 : vector<16x1xf32> to vector<16x160xf32>
    %76 = arith.mulf %73, %75 : vector<16x160xf32>
    %77 = arith.addf %72, %76 : vector<16x160xf32>
    %c16_i32_32 = arith.constant 16 : i32
    %78 = tpu.dynamic_rotate %52 by %c16_i32_32 dim 1 : vector<16x160xf32>, i32 -> vector<16x160xf32>
    %79 = vector.extract_strided_slice %53 {offsets = [0, 1], sizes = [16, 1], strides = [1, 1]} : vector<16x9xf32> to vector<16x1xf32>
    %80 = vector.broadcast %79 : vector<16x1xf32> to vector<16x160xf32>
    %81 = arith.mulf %78, %80 : vector<16x160xf32>
    %82 = arith.addf %77, %81 : vector<16x160xf32>
    %c16_i32_33 = arith.constant 16 : i32
    %83 = tpu.dynamic_rotate %61 by %c16_i32_33 dim 1 : vector<16x160xf32>, i32 -> vector<16x160xf32>
    %84 = vector.extract_strided_slice %53 {offsets = [0, 2], sizes = [16, 1], strides = [1, 1]} : vector<16x9xf32> to vector<16x1xf32>
    %85 = vector.broadcast %84 : vector<16x1xf32> to vector<16x160xf32>
    %86 = arith.mulf %83, %85 : vector<16x160xf32>
    %87 = arith.addf %82, %86 : vector<16x160xf32>
    %c144_i32_34 = arith.constant 144 : i32
    %88 = tpu.dynamic_rotate %58 by %c144_i32_34 dim 1 : vector<16x160xf32>, i32 -> vector<16x160xf32>
    %89 = vector.extract_strided_slice %53 {offsets = [0, 6], sizes = [16, 1], strides = [1, 1]} : vector<16x9xf32> to vector<16x1xf32>
    %90 = vector.broadcast %89 : vector<16x1xf32> to vector<16x160xf32>
    %91 = arith.mulf %88, %90 : vector<16x160xf32>
    %92 = arith.addf %87, %91 : vector<16x160xf32>
    %c144_i32_35 = arith.constant 144 : i32
    %93 = tpu.dynamic_rotate %52 by %c144_i32_35 dim 1 : vector<16x160xf32>, i32 -> vector<16x160xf32>
    %94 = vector.extract_strided_slice %53 {offsets = [0, 7], sizes = [16, 1], strides = [1, 1]} : vector<16x9xf32> to vector<16x1xf32>
    %95 = vector.broadcast %94 : vector<16x1xf32> to vector<16x160xf32>
    %96 = arith.mulf %93, %95 : vector<16x160xf32>
    %97 = arith.addf %92, %96 : vector<16x160xf32>
    %c144_i32_36 = arith.constant 144 : i32
    %98 = tpu.dynamic_rotate %61 by %c144_i32_36 dim 1 : vector<16x160xf32>, i32 -> vector<16x160xf32>
    %99 = vector.extract_strided_slice %53 {offsets = [0, 8], sizes = [16, 1], strides = [1, 1]} : vector<16x9xf32> to vector<16x1xf32>
    %100 = vector.broadcast %99 : vector<16x1xf32> to vector<16x160xf32>
    %101 = arith.mulf %98, %100 : vector<16x160xf32>
    %102 = arith.addf %97, %101 : vector<16x160xf32>
    %103 = vector.extract_strided_slice %102 {offsets = [0, 16], sizes = [16, 128], strides = [1, 1]} : vector<16x160xf32> to vector<16x128xf32>
    %c0_37 = arith.constant 0 : index
    %c0_38 = arith.constant 0 : index
    %104 = vector.load %arg12[%c0_37, %c0_38] : memref<16x1xf32, #tpu.memory_space<vmem>>, vector<16x1xf32>
    %105 = vector.broadcast %104 : vector<16x1xf32> to vector<16x128xf32>
    %106 = arith.addf %103, %105 : vector<16x128xf32>
    %107 = math.absf %106 : vector<16x128xf32>
    %cst_39 = arith.constant 0.000000e+00 : f32
    %108 = vector.broadcast %cst_39 : f32 to vector<16x128xf32>
    %109 = arith.subf %108, %107 : vector<16x128xf32>
    %110 = math.exp %109 : vector<16x128xf32>
    %cst_40 = arith.constant 1.000000e+00 : f32
    %111 = vector.broadcast %cst_40 : f32 to vector<16x128xf32>
    %112 = arith.addf %111, %110 : vector<16x128xf32>
    %113 = tpu.reciprocal %112 {approx = true} : vector<16x128xf32> -> vector<16x128xf32>
    %cst_41 = arith.constant 0.000000e+00 : f32
    %114 = vector.broadcast %cst_41 : f32 to vector<16x128xf32>
    %115 = arith.cmpf oge, %106, %114 : vector<16x128xf32>
    %cst_42 = arith.constant 1.000000e+00 : f32
    %116 = vector.broadcast %cst_42 : f32 to vector<16x128xf32>
    %117 = arith.subf %116, %113 : vector<16x128xf32>
    %118 = arith.select %115, %113, %117 : vector<16x128xi1>, vector<16x128xf32>
    %119 = arith.mulf %106, %118 : vector<16x128xf32>
    %c0_i32_43 = arith.constant 0 : i32
    %120 = arith.cmpi eq, %arg1, %c0_i32_43 : i32
    %c0_i32_44 = arith.constant 0 : i32
    %121 = arith.cmpi eq, %arg2, %c0_i32_44 : i32
    %122 = arith.andi %120, %121 : i1
    %123 = arith.extui %122 : i1 to i32
    %c0_i32_45 = arith.constant 0 : i32
    %124 = arith.cmpi ne, %123, %c0_i32_45 : i32
    scf.if %124 {
      %cst_53 = arith.constant 0.000000e+00 : f32
      %136 = vector.broadcast %cst_53 : f32 to vector<16x1xf32>
      %c0_54 = arith.constant 0 : index
      %c0_55 = arith.constant 0 : index
      %137 = vector.load %arg20[%c0_54, %c0_55] : memref<16x1xf32, #tpu.memory_space<vmem>>, vector<16x1xf32>
      tpu.vector_store %arg20[%c0_54, %c0_55], %136 {strides = array<i32>} : memref<16x1xf32, #tpu.memory_space<vmem>>, vector<16x1xf32>,
    } else {
    }
    %c0_i32_46 = arith.constant 0 : i32
    %125 = arith.cmpi eq, %arg1, %c0_i32_46 : i32
    %126 = arith.extui %125 : i1 to i32
    %c0_i32_47 = arith.constant 0 : i32
    %127 = arith.cmpi ne, %126, %c0_i32_47 : i32
    scf.if %127 {
      %c0_53 = arith.constant 0 : index
      %c0_54 = arith.constant 0 : index
      %136 = vector.load %arg20[%c0_53, %c0_54] : memref<16x1xf32, #tpu.memory_space<vmem>>, vector<16x1xf32>
      %cst_55 = arith.constant dense<0.000000e+00> : vector<16xf32>
      %137 = vector.multi_reduction <add>, %119, %cst_55 [1] : vector<16x128xf32> to vector<16xf32>
      %138 = vector.shape_cast %137 : vector<16xf32> to vector<16x1xf32>
      %139 = arith.addf %136, %138 : vector<16x1xf32>
      %c0_56 = arith.constant 0 : index
      %c0_57 = arith.constant 0 : index
      %140 = vector.load %arg20[%c0_56, %c0_57] : memref<16x1xf32, #tpu.memory_space<vmem>>, vector<16x1xf32>
      tpu.vector_store %arg20[%c0_56, %c0_57], %139 {strides = array<i32>} : memref<16x1xf32, #tpu.memory_space<vmem>>, vector<16x1xf32>,
    } else {
    }
    %c1_i32_48 = arith.constant 1 : i32
    %128 = arith.cmpi eq, %arg1, %c1_i32_48 : i32
    %c0_i32_49 = arith.constant 0 : i32
    %129 = arith.cmpi eq, %arg2, %c0_i32_49 : i32
    %130 = arith.andi %128, %129 : i1
    %131 = arith.extui %130 : i1 to i32
    %c0_i32_50 = arith.constant 0 : i32
    %132 = arith.cmpi ne, %131, %c0_i32_50 : i32
    scf.if %132 {
      %c0_53 = arith.constant 0 : index
      %c0_54 = arith.constant 0 : index
      %136 = vector.load %arg20[%c0_53, %c0_54] : memref<16x1xf32, #tpu.memory_space<vmem>>, vector<16x1xf32>
      %cst_55 = arith.constant 3.906250e-03 : f32
      %137 = vector.broadcast %cst_55 : f32 to vector<16x1xf32>
      %138 = arith.mulf %136, %137 : vector<16x1xf32>
      %c0_56 = arith.constant 0 : index
      %c0_57 = arith.constant 0 : index
      %139 = vector.load %arg13[%c0_56, %c0_57] : memref<16x2xf32, #tpu.memory_space<vmem>>, vector<16x2xf32>
      %140 = vector.broadcast %138 : vector<16x1xf32> to vector<16x2xf32>
      %141 = arith.mulf %139, %140 : vector<16x2xf32>
      %cst_58 = arith.constant dense<0.000000e+00> : vector<2xf32>
      %142 = vector.multi_reduction <add>, %141, %cst_58 [0] : vector<16x2xf32> to vector<2xf32>
      %143 = vector.shape_cast %142 : vector<2xf32> to vector<1x2xf32>
      %c0_59 = arith.constant 0 : index
      %c0_60 = arith.constant 0 : index
      %144 = vector.load %arg14[%c0_59, %c0_60] : memref<1x2xf32, #tpu.memory_space<vmem>>, vector<1x2xf32>
      %145 = arith.addf %143, %144 : vector<1x2xf32>
      %146 = math.absf %145 : vector<1x2xf32>
      %cst_61 = arith.constant 0.000000e+00 : f32
      %147 = vector.broadcast %cst_61 : f32 to vector<1x2xf32>
      %148 = arith.subf %147, %146 : vector<1x2xf32>
      %149 = math.exp %148 : vector<1x2xf32>
      %cst_62 = arith.constant 1.000000e+00 : f32
      %150 = vector.broadcast %cst_62 : f32 to vector<1x2xf32>
      %151 = arith.addf %150, %149 : vector<1x2xf32>
      %152 = tpu.reciprocal %151 {approx = true} : vector<1x2xf32> -> vector<1x2xf32>
      %cst_63 = arith.constant 0.000000e+00 : f32
      %153 = vector.broadcast %cst_63 : f32 to vector<1x2xf32>
      %154 = arith.cmpf oge, %145, %153 : vector<1x2xf32>
      %cst_64 = arith.constant 1.000000e+00 : f32
      %155 = vector.broadcast %cst_64 : f32 to vector<1x2xf32>
      %156 = arith.subf %155, %152 : vector<1x2xf32>
      %157 = arith.select %154, %152, %156 : vector<1x2xi1>, vector<1x2xf32>
      %158 = arith.mulf %145, %157 : vector<1x2xf32>
      %c0_65 = arith.constant 0 : index
      %c0_66 = arith.constant 0 : index
      %159 = vector.load %arg15[%c0_65, %c0_66] : memref<16x2xf32, #tpu.memory_space<vmem>>, vector<16x2xf32>
      %160 = vector.broadcast %158 : vector<1x2xf32> to vector<16x2xf32>
      %161 = arith.mulf %159, %160 : vector<16x2xf32>
      %cst_67 = arith.constant dense<0.000000e+00> : vector<16xf32>
      %162 = vector.multi_reduction <add>, %161, %cst_67 [1] : vector<16x2xf32> to vector<16xf32>
      %163 = vector.shape_cast %162 : vector<16xf32> to vector<16x1xf32>
      %c0_68 = arith.constant 0 : index
      %c0_69 = arith.constant 0 : index
      %164 = vector.load %arg16[%c0_68, %c0_69] : memref<16x1xf32, #tpu.memory_space<vmem>>, vector<16x1xf32>
      %165 = arith.addf %163, %164 : vector<16x1xf32>
      %166 = math.absf %165 : vector<16x1xf32>
      %cst_70 = arith.constant 0.000000e+00 : f32
      %167 = vector.broadcast %cst_70 : f32 to vector<16x1xf32>
      %168 = arith.subf %167, %166 : vector<16x1xf32>
      %169 = math.exp %168 : vector<16x1xf32>
      %cst_71 = arith.constant 1.000000e+00 : f32
      %170 = vector.broadcast %cst_71 : f32 to vector<16x1xf32>
      %171 = arith.addf %170, %169 : vector<16x1xf32>
      %172 = tpu.reciprocal %171 {approx = true} : vector<16x1xf32> -> vector<16x1xf32>
      %cst_72 = arith.constant 0.000000e+00 : f32
      %173 = vector.broadcast %cst_72 : f32 to vector<16x1xf32>
      %174 = arith.cmpf oge, %165, %173 : vector<16x1xf32>
      %cst_73 = arith.constant 1.000000e+00 : f32
      %175 = vector.broadcast %cst_73 : f32 to vector<16x1xf32>
      %176 = arith.subf %175, %172 : vector<16x1xf32>
      %177 = arith.select %174, %172, %176 : vector<16x1xi1>, vector<16x1xf32>
      %c0_74 = arith.constant 0 : index
      %c0_75 = arith.constant 0 : index
      %178 = vector.load %arg20[%c0_74, %c0_75] : memref<16x1xf32, #tpu.memory_space<vmem>>, vector<16x1xf32>
      tpu.vector_store %arg20[%c0_74, %c0_75], %177 {strides = array<i32>} : memref<16x1xf32, #tpu.memory_space<vmem>>, vector<16x1xf32>,
    } else {
    }
    %c1_i32_51 = arith.constant 1 : i32
    %133 = arith.cmpi eq, %arg1, %c1_i32_51 : i32
    %134 = arith.extui %133 : i1 to i32
    %c0_i32_52 = arith.constant 0 : i32
    %135 = arith.cmpi ne, %134, %c0_i32_52 : i32
    scf.if %135 {
      %c0_53 = arith.constant 0 : index
      %c0_54 = arith.constant 0 : index
      %136 = vector.load %arg20[%c0_53, %c0_54] : memref<16x1xf32, #tpu.memory_space<vmem>>, vector<16x1xf32>
      %137 = vector.broadcast %136 : vector<16x1xf32> to vector<16x128xf32>
      %138 = arith.mulf %119, %137 : vector<16x128xf32>
      %c0_55 = arith.constant 0 : index
      %c0_56 = arith.constant 0 : index
      %139 = vector.load %arg17[%c0_55, %c0_56] : memref<8x16xbf16, #tpu.memory_space<vmem>>, vector<8x16xbf16>
      %140 = arith.truncf %138 : vector<16x128xf32> to vector<16x128xbf16>
      %cst_57 = arith.constant dense<0.000000e+00> : vector<8x128xf32>
      %141 = tpu.matmul %139, %140, %cst_57 {dimension_numbers = #tpu.dot_dimension_numbers<[1], [0], [0], [1], [0, 0, 1, 1], [], []>} : vector<8x16xbf16>, vector<16x128xbf16>, vector<8x128xf32> -> vector<8x128xf32>
      %c0_58 = arith.constant 0 : index
      %c0_59 = arith.constant 0 : index
      %142 = vector.load %arg18[%c0_58, %c0_59] : memref<8x1xf32, #tpu.memory_space<vmem>>, vector<8x1xf32>
      %143 = vector.broadcast %142 : vector<8x1xf32> to vector<8x128xf32>
      %144 = arith.addf %141, %143 : vector<8x128xf32>
      %145 = vector.extract_strided_slice %17 {offsets = [0, 16], sizes = [8, 128], strides = [1, 1]} : vector<8x160xf32> to vector<8x128xf32>
      %146 = arith.addf %144, %145 : vector<8x128xf32>
      %c0_60 = arith.constant 0 : index
      %c0_61 = arith.constant 0 : index
      %c0_62 = arith.constant 0 : index
      %147 = vector.load %arg19[%c0_60, %c0_61, %c0_62] : memref<1x8x128xf32, #tpu.memory_space<vmem>>, vector<1x8x128xf32>
      %148 = vector.shape_cast %147 : vector<1x8x128xf32> to vector<8x128xf32>
      %149 = vector.shape_cast %146 : vector<8x128xf32> to vector<1x8x128xf32>
      tpu.vector_store %arg19[%c0_60, %c0_61, %c0_62], %149 {strides = array<i32>} : memref<1x8x128xf32, #tpu.memory_space<vmem>>, vector<1x8x128xf32>,
    } else {
    }
    return
  }
  func.func @transform_0(%arg0: i32, %arg1: i32, %arg2: i32) -> (i32, i32, i32) {
    %c0_i32 = arith.constant 0 : i32
    %c0_i32_0 = arith.constant 0 : i32
    return %arg0, %c0_i32, %arg2 : i32, i32, i32
  }
  func.func @transform_1(%arg0: i32, %arg1: i32, %arg2: i32) -> (i32, i32, i32, i32) {
    %c0_i32 = arith.constant 0 : i32
    %c0_i32_0 = arith.constant 0 : i32
    %c0_i32_1 = arith.constant 0 : i32
    return %arg0, %arg2, %c0_i32, %c0_i32_0 : i32, i32, i32, i32
  }
  func.func @transform_2(%arg0: i32, %arg1: i32, %arg2: i32) -> (i32, i32, i32, i32) {
    %c0_i32 = arith.constant 0 : i32
    %c0_i32_0 = arith.constant 0 : i32
    %c0_i32_1 = arith.constant 0 : i32
    return %arg0, %arg2, %c0_i32, %c0_i32_0 : i32, i32, i32, i32
  }
  func.func @transform_3(%arg0: i32, %arg1: i32, %arg2: i32) -> (i32, i32) {
    %c0_i32 = arith.constant 0 : i32
    %c0_i32_0 = arith.constant 0 : i32
    %c0_i32_1 = arith.constant 0 : i32
    return %c0_i32, %c0_i32_0 : i32, i32
  }
  func.func @transform_4(%arg0: i32, %arg1: i32, %arg2: i32) -> (i32, i32) {
    %c0_i32 = arith.constant 0 : i32
    %c0_i32_0 = arith.constant 0 : i32
    %c0_i32_1 = arith.constant 0 : i32
    return %c0_i32, %c0_i32_0 : i32, i32
  }
  func.func @transform_5(%arg0: i32, %arg1: i32, %arg2: i32) -> (i32, i32) {
    %c0_i32 = arith.constant 0 : i32
    %c0_i32_0 = arith.constant 0 : i32
    %c0_i32_1 = arith.constant 0 : i32
    return %c0_i32, %c0_i32_0 : i32, i32
  }
  func.func @transform_6(%arg0: i32, %arg1: i32, %arg2: i32) -> (i32, i32) {
    %c0_i32 = arith.constant 0 : i32
    %c0_i32_0 = arith.constant 0 : i32
    %c0_i32_1 = arith.constant 0 : i32
    return %c0_i32, %c0_i32_0 : i32, i32
  }
  func.func @transform_7(%arg0: i32, %arg1: i32, %arg2: i32) -> (i32, i32) {
    %c0_i32 = arith.constant 0 : i32
    %c0_i32_0 = arith.constant 0 : i32
    %c0_i32_1 = arith.constant 0 : i32
    return %c0_i32, %c0_i32_0 : i32, i32
  }
  func.func @transform_8(%arg0: i32, %arg1: i32, %arg2: i32) -> (i32, i32) {
    %c0_i32 = arith.constant 0 : i32
    %c0_i32_0 = arith.constant 0 : i32
    %c0_i32_1 = arith.constant 0 : i32
    return %c0_i32, %c0_i32_0 : i32, i32
  }
  func.func @transform_9(%arg0: i32, %arg1: i32, %arg2: i32) -> (i32, i32) {
    %c0_i32 = arith.constant 0 : i32
    %c0_i32_0 = arith.constant 0 : i32
    %c0_i32_1 = arith.constant 0 : i32
    return %c0_i32, %c0_i32_0 : i32, i32
  }
  func.func @transform_10(%arg0: i32, %arg1: i32, %arg2: i32) -> (i32, i32) {
    %c0_i32 = arith.constant 0 : i32
    %c0_i32_0 = arith.constant 0 : i32
    %c0_i32_1 = arith.constant 0 : i32
    return %c0_i32, %c0_i32_0 : i32, i32
  }
  func.func @transform_11(%arg0: i32, %arg1: i32, %arg2: i32) -> (i32, i32) {
    %c0_i32 = arith.constant 0 : i32
    %c0_i32_0 = arith.constant 0 : i32
    %c0_i32_1 = arith.constant 0 : i32
    return %c0_i32, %c0_i32_0 : i32, i32
  }
  func.func @transform_12(%arg0: i32, %arg1: i32, %arg2: i32) -> (i32, i32) {
    %c0_i32 = arith.constant 0 : i32
    %c0_i32_0 = arith.constant 0 : i32
    %c0_i32_1 = arith.constant 0 : i32
    return %c0_i32, %c0_i32_0 : i32, i32
  }
  func.func @transform_13(%arg0: i32, %arg1: i32, %arg2: i32) -> (i32, i32) {
    %c0_i32 = arith.constant 0 : i32
    %c0_i32_0 = arith.constant 0 : i32
    %c0_i32_1 = arith.constant 0 : i32
    return %c0_i32, %c0_i32_0 : i32, i32
  }
  func.func @transform_14(%arg0: i32, %arg1: i32, %arg2: i32) -> (i32, i32) {
    %c0_i32 = arith.constant 0 : i32
    %c0_i32_0 = arith.constant 0 : i32
    %c0_i32_1 = arith.constant 0 : i32
    return %c0_i32, %c0_i32_0 : i32, i32
  }
  func.func @transform_15(%arg0: i32, %arg1: i32, %arg2: i32) -> (i32, i32) {
    %c0_i32 = arith.constant 0 : i32
    %c0_i32_0 = arith.constant 0 : i32
    %c0_i32_1 = arith.constant 0 : i32
    return %c0_i32, %c0_i32_0 : i32, i32
  }
  func.func @transform_16(%arg0: i32, %arg1: i32, %arg2: i32) -> (i32, i32, i32) {
    %0 = arith.muli %arg2, %arg1 : i32
    %c0_i32 = arith.constant 0 : i32
    %c0_i32_0 = arith.constant 0 : i32
    return %arg0, %c0_i32, %0 : i32, i32, i32
  }
}

</mosaic_0001>

<bundles_post_ra>
// kernel: tpu_custom_call.1
= control target key start
LH: loop header
LB: loop body
LE: loop exit
PB: predicated region body
PF: predicated region fallthrough
CT: control target
= control target key end

     0   :  { %s2573_s0 = inlined_call_operand.vmem [shape: f32[2,8,256], index: 0, kind: input, shape index: {}]   ;;  %s2574_s1 = inlined_call_operand.vmem [shape: f32[2,2,8,16], index: 1, kind: input, shape index: {}]   ;;  %s2575_s2 = inlined_call_operand.vmem [shape: f32[2,2,8,16], index: 2, kind: input, shape index: {}]   ;;  %s2576_s3 = inlined_call_operand.vmem [shape: f32[2,160], index: 3, kind: input, shape index: {}]   ;;  %s2577_s4 = inlined_call_operand.vmem [shape: bf16[8,8], index: 4, kind: input, shape index: {}]   ;;  %s2578_s5 = inlined_call_operand.vmem [shape: f32[8,1], index: 5, kind: input, shape index: {}]   ;;  %s2579_s6 = inlined_call_operand.vmem [shape: bf16[16,8], index: 6, kind: input, shape index: {}]   ;;  %s2580_s7 = inlined_call_operand.vmem [shape: f32[16,1], index: 7, kind: input, shape index: {}]   ;;  %s2581_s8 = inlined_call_operand.vmem [shape: f32[16,9], index: 8, kind: input, shape index: {}]   ;;  %s2582_s9 = inlined_call_operand.vmem [shape: f32[16,1], index: 9, kind: input, shape index: {}]   ;;  %s2583_s10 = inlined_call_operand.vmem [shape: f32[16,2], index: 10, kind: input, shape index: {}]   ;;  %s2584_s11 = inlined_call_operand.vmem [shape: f32[1,2], index: 11, kind: input, shape index: {}]   ;;  %s2585_s12 = inlined_call_operand.vmem [shape: f32[16,2], index: 12, kind: input, shape index: {}]   ;;  %s2586_s13 = inlined_call_operand.vmem [shape: f32[16,1], index: 13, kind: input, shape index: {}]   ;;  %s2587_s14 = inlined_call_operand.vmem [shape: bf16[8,16], index: 14, kind: input, shape index: {}]   ;;  %s2588_s15 = inlined_call_operand.vmem [shape: f32[8,1], index: 15, kind: input, shape index: {}]   ;;  %s2589_s16 = inlined_call_operand.hbm [shape: f32[2,8,256], index: 16, kind: output, shape index: {}]  }
   0x1   :  { %2605 = sst [smem:[#allocation18_spill]] %s2573_s0 }
   0x2   :  { %2606 = sst [smem:[#allocation19_spill]] %s2574_s1 }
   0x3   :  { %2607 = sst [smem:[#allocation20_spill]] %s2575_s2 }
   0x4   :  { %2608 = sst [smem:[#allocation21_spill]] %s2587_s14 }
   0x5   :  { %2609 = sst [smem:[#allocation22_spill]] %s2588_s15 }
   0x6   :  { %2610 = sst [smem:[#allocation23_spill]] %s2589_s16 }
   0x7   :  { %21 = vsyncpa [#allocation4], 0 }
   0x8   :  { %23 = vsyncpa [#allocation4 + $0x1], 0  ;;  %s2050_s21 = smov 0   ;;  %s2052_s22 = smov 0  }
   0x9   :  { %s2054_s23 = smov 0   ;;  %s2056_s24 = smov 0  }
   0xa   :  { %s2058_s25 = smov 0   ;;  %s2060_s26 = smov 0  }
   0xb   :  { %s2062_s27 = smov 0   ;;  %s2064_s28 = smov 0  }
   0xc   :  { %s2066_s29 = smov 0   ;;  %s2068_s30 = smov 0  }
   0xd LB: > { %2611 = sst [smem:[#allocation6_spill]] %s1905_s21  ;;  %s1619_s0 = sadd.s32 4294967295, %s1941_s30   ;;  %s1941_s30 = sphi %s2068_s30, %s29_s30   ;;  %s1937_s29 = sphi %s2066_s29, %s2647_s29   ;;  %s1933_s28 = sphi %s2064_s28, %s2646_s28   ;;  %s1929_s27 = sphi %s2062_s27, %s2645_s27   ;;  %s1925_s26 = sphi %s2060_s26, %s2644_s26   ;;  %s1921_s25 = sphi %s2058_s25, %s2643_s25   ;;  %s1917_s24 = sphi %s2056_s24, %s2650_s24   ;;  %s1913_s23 = sphi %s2054_s23, %s2641_s23   ;;  %s1909_s22 = sphi %s2052_s22, %s2649_s22   ;;  %s1905_s21 = sphi %s2050_s21, %s2648_s21  }
   0xe   : > { %2612 = sst [smem:[#allocation7_spill]] %s1913_s23  ;;  %s1620_s17 = sadd.s32 4294967294, %s1941_s30  }
   0xf   : > { %2613 = sst [smem:[#allocation8_spill]] %s1929_s27  ;;  %s41_s18 = sadd.s32 1, %s1929_s27 }
  0x10   : > { %2614 = sst [smem:[#allocation9_spill]] %s1933_s28  ;;  %p42_p0 = scmp.ge.s32.totalorder %s41_s18, 2 }
  0x11   : > { %2615 = sst [smem:[#allocation10_spill]] %s1937_s29  ;;  %s44_s19 = sadd.s32 1, %s1933_s28 }
  0x12   : > { %2616 = sst [smem:[#allocation11_spill]] %s1941_s30  ;;  %s48_s20 = sadd.s32 1, %s1937_s29 }
  0x13   : > { %s409_s16 = smul.u32 %s1929_s27, %s1933_s28  ;;  %s2652_s18 = smov (%p42_p0, %s41_s18), 0 }
  0x14   : > { %2617 = sst [smem:[#allocation12_spill]] %s2652_s18  ;;  %s2654_s19 = smov (!%p42_p0, %s44_s19), %s1933_s28 }
  0x15   : > { %p426_p1 = scmp.ne.s32.totalorder %s1913_s23, %s1909_s22  ;;  %p427_p2 = scmp.eq.s32.totalorder %s1619_s0, 7 }
  0x16   : > { %p46_p3 = scmp.ge.s32.totalorder %s2654_s19, 2  ;;  %p432_p4 = scmp.ne.s32.totalorder %s1909_s22, %s1905_s21 }
  0x17   : > { %p2114_p5 = por %p427_p2, %p426_p1  ;;  %p433_p6 = scmp.eq.s32.totalorder %s1620_s17, 7 }
  0x18   : > { %s2656_s19 = smov (%p46_p3, %s2654_s19), 0  ;;  %s2658_s20 = smov (!%p46_p3, %s48_s20), %s1937_s29 }
  0x19   : > { %s2618_s14 = scalar_select %p2114_p5, 1, 0 }
  0x1a   : > { %2620 = sst [smem:[#allocation14_spill]] %s2656_s19  ;;  %s410_s27 = smul.u32 %s2656_s19, %s2652_s18 }
  0x1b   : > { %2619 = sst [smem:[#allocation13_spill]] %s2618_s14  ;;  %p2123_p7 = por %p433_p6, %p432_p4 }
  0x1c   : > { %p50_p8 = scmp.ge.s32.totalorder %s2658_s20, 2  ;;  %p1623_p9 = scmp.ge.s32.totalorder %s1941_s30, 1 }
  0x1d   : > { %s2621_s15 = scalar_select %p2123_p7, 1, 0 }
  0x1e   : > { %s412_s0 = ssub.s32 %s409_s16, %s410_s27  ;;  %p523_p10 = scmp.lt.s32.totalorder %s1941_s30, 9 }
  0x1f   : > { %2622 = sst [smem:[#allocation15_spill]] %s2621_s15  ;;  %s2660_s20 = smov (%p50_p8, %s2658_s20), 0 }
  0x20   : > { %2623 = sst [smem:[#allocation16_spill]] %s2660_s20  ;;  %p524_p11 = pnand %p1623_p9, %p523_p10 }
  0x21   : > { %s411_s28 = ssub.s32 %s1937_s29, %s2660_s20  ;;  %s416_s17 = sadd.s32 1, %s1913_s23  ;;  %v1943_v0 = vmov (!%p524_p11), 0   ;;  %v637_v2 = vld [vmem:[%s2578_s5] sm:$0xff] (!%p524_p11)  ;;  %vm629_vm0 = vcmask (!%p524_p11), 130048   ;;  %vm647_vm1 = vcmask (!%p524_p11), 1043456   ;;  %vm643_vm2 = vcmask (!%p524_p11), 64512  }
  0x22   : > { %s413_s21 = sor.u32 %s412_s0, %s411_s28  ;;  %527 = sbr.rel (%p524_p11) target bundleno = 2608 (0xa30), region = 84  ;;  %686 = vmatprep.mubr.bf16.mxu0 (!%p524_p11), %v1943_v0  ;;  %1761 = vset.pattern.permute.xlu1 (!%p524_p11), %v1943_v0  ;;  %v717_v4 = vld [vmem:[%s2580_s7] sm:$0xff] (!%p524_p11)  ;;  %v718_v16 = vld [vmem:[%s2580_s7 + $0x8] sm:$0xff] (!%p524_p11) }
  0x23   : > { %p414_p12 = scmp.eq.s32.totalorder %s413_s21, 0  ;;  %p592_p13 = scmp.lt.s32.totalorder (!%p524_p11), %s1925_s26, 1  ;;  %775 = vmatprep.mubr.bf16.mxu1 (!%p524_p11), %v1943_v0  ;;  %1762 = vset.pattern.permute.xlu0 (!%p524_p11), %v1943_v0  ;;  %v636_v15 = vld [vmem:[%s2577_s4] sm:$0xf] (!%p524_p11) }
  0x24   : > { %p594_p0 = scmp.lt.s32.totalorder (!%p524_p11), %s1917_s24, 1  ;;  %s2604_s16 = sand.u32 (!%p524_p11), 1, %s1909_s22   ;;  %640 = vperm.xlu1 (!%p524_p11), %1761, %v637_v2   ;;  %v1780_v41 = vld [vmem:[%s2579_s6] sm:$0xff] (!%p524_p11)  }
  0x25   : > { %s2135_s14 = scalar_select %p414_p12, %s1913_s23, %s416_s17  }
  0x26   : > { %s2144_s20 = sshll.u32 (!%p524_p11), %s2604_s16, 3  ;;  %s2625_s29 = sld [smem:[#allocation18_spill]] (!%p524_p11) }
  0x27   : > { %2624 = sst [smem:[#allocation17_spill]] %s2135_s14  ;;  %s2626_s2 = sld [smem:[#allocation20_spill]] (!%p524_p11) }
  0x28   : > { %721 = vperm.xlu1 (!%p524_p11), %1761, %v717_v4   ;;  %s2627_s1 = sld [smem:[#allocation19_spill]] (!%p524_p11)  ;;  %p829_p1 = scmp.eq.s32.totalorder (!%p524_p11), %s1917_s24, 0 }
  0x29   : > { %s593_s27 = scalar_select %p592_p13, %s1925_s26, 1 }
  0x2a   : > { %s595_s19 = scalar_select %p594_p0, %s1917_s24, 1 }
  0x2b   : > { %s1625_s18 = sshll.u32 %s593_s27, 1  ;;  %p1270_p2 = scmp.eq.s32.totalorder %s1921_s25, 0 }
  0x2c   : > { %s597_s28 = sadd.s32 %s1625_s18, %s595_s19  ;;  %s1944_s18 = smov 16  }
  0x2d   : > { %s1626_s21 = sshll.u32 %s597_s28, 3  ;;  %p2194_p3 = pnand %p1270_p2, %p829_p1 }
  0x2e   : > { %s599_s14 = scalar_lea.vmem %s2625_s29, %s1626_s21  ;;  %s615_s30 = scalar_lea.vmem %s2626_s2, %s1626_s21 }
  0x2f   : > { %v619_v1 = vld [vmem:[%s599_s14] sm:$0xff]  ;;  %s607_s28 = scalar_lea.vmem %s2627_s1, %s1626_s21  ;;  %p837_p4 = scmp.eq.s32.totalorder %s1917_s24, 1 }
  0x30   : > { %622 = vrot.lane.b32.xlu0 %v619_v1, %s1944_s18  ;;  %v620_v3 = vld [vmem:[%s615_s30] sm:$0xff]  ;;  %s832_s15 = scalar_select %p829_p1, 1, 0 }
  0x31   : > { %v618_v5 = vld [vmem:[%s607_s28] sm:$0xff]  ;;  %s840_s23 = scalar_select %p837_p4, 1, 0 }
  0x32   : > { %s1945_s29 = smov 32   ;;  %s1946_s0 = smov 97  }
  0x33   : > { %s1947_s17 = smov 127   ;;  %s1955_s14 = smov 112  }
  0x34   : > { %626 = vrot.lane.b32.xlu0 %v620_v3, %s1944_s18 }
  0x38   : > { %726 = vperm.xlu0 %1762, %v718_v16  }
  0xa2   : > { %v623_v6 = vpop.permute.xlu0 %622 }
  0xa3   : > { %v630_v7 = vsel %vm629_vm0, %v618_v5, %v623_v6  ;;  %v641_v17 = vpop.permute.xlu1 %640 }
  0xa4   : > { %v632_v8 = vmul.f32 %v630_v7, %v630_v7 }
  0xa6   : > { %v627_v9 = vpop.permute.xlu0 %626  ;;  %v634_v12 = vpack.c.bf16 %v632_v8, %v632_v8 }
  0xa7   : > { %v631_v10 = vsel %vm629_vm0, %v623_v6, %v627_v9  ;;  %v722_v42 = vpop.permute.xlu1 %721  ;;  %v826_v6 = vlaneseq }
  0xa8   : > { %v633_v11 = vmul.f32 %v631_v10, %v631_v10  ;;  %v649_v14 = vsel %vm647_vm1, %v634_v12, 0 }
  0xaa   : > { %v635_v13 = vpack.c.bf16 %v633_v11, %v633_v11  ;;  %v833_v11 = vstv %s832_s15 }
  0xab   : > { %vm834_vm8 = vcmp.eq.s32.totalorder %v833_v11, 1  ;;  %v1948_v11 = vmov 1  }
  0xac   : > { %1631 = vmatprep.subr.msk.bf16.mxu0 %vm647_vm1, %v635_v13  ;;  %v841_v13 = vstv %s840_s23 }
  0xad   : > { %655 = vmatpush1.bf16.msra.mxu0 %v649_v14  ;;  %vm842_vm10 = vcmp.eq.s32.totalorder %v841_v13, 1  ;;  %v1950_v13 = vmov 6  }
  0xb0   : > { %1632 = vmatmul.mubr.msk.bf16.vlgmr.msra.gmra.mrb[0].mxu0 %vm643_vm2, %v636_v15 }
  0xb7   : > { %v727_v44 = vpop.permute.xlu0 %726 }
 0x183   : > { %v688_v18 = vpop.f32.mrb[0].mxu0 }
 0x184   : > { %v689_v19 = vadd.f32 %v688_v18, %v641_v17  ;;  %v690_v20 = vpop.f32.mrb[1].mxu0 }
 0x185   : > { %v691_v21 = vadd.f32 %v690_v20, %v641_v17  ;;  %v692_v22 = vpop.f32.mrb[2].mxu0 }
 0x186   : > { %v695_v23 = vmax.f32 %v689_v19, 1e-12  ;;  %v693_v24 = vpop.f32.mrb[3].mxu0 }
 0x187   : > { %v696_v25 = vmax.f32 %v691_v21, 1e-12 }
 0x188   : > { %1781 = vrsqrt.f32 %v695_v23  ;;  %vm699_vm3 = vcmp.eq.f32.partialorder %v695_v23, inf  ;;  %v702_v30 = vand.u32 2147483648, %v695_v23  ;;  %vm701_vm5 = vcmp.eq.f32.partialorder %v695_v23, 0.0 }
 0x189   : > { %1783 = vrsqrt.f32 %v696_v25  ;;  %vm706_vm4 = vcmp.eq.f32.partialorder %v696_v25, inf  ;;  %v709_v31 = vand.u32 2147483648, %v696_v25  ;;  %vm708_vm6 = vcmp.eq.f32.partialorder %v696_v25, 0.0 }
 0x192   : > { %v1782_v26 = vpop.eup %1781 }
 0x193   : > { %v1784_v27 = vpop.eup %1783  ;;  %v698_v28 = vmul.f32 %v1782_v26, %v695_v23 }
 0x194   : > { %v705_v29 = vmul.f32 %v1784_v27, %v696_v25 }
 0x195   : > { %v700_v32 = vsel %vm699_vm3, %v695_v23, %v698_v28  ;;  %vm896_vm3 = vcmask 793600  }
 0x196   : > { %v707_v33 = vsel %vm706_vm4, %v696_v25, %v705_v29  ;;  %v703_v34 = vsel %vm701_vm5, %v702_v30, %v700_v32  ;;  %vm928_vm4 = vcmask 1039360   ;;  %vm1021_vm5 = vcmask 916480  }
 0x197   : > { %v710_v35 = vsel %vm708_vm6, %v709_v31, %v707_v33  ;;  %v2176_v36 = vmul.f32 %v703_v34, %v630_v7 }
 0x198   : > { %v2178_v37 = vmul.f32 %v710_v35, %v631_v10  ;;  %v827_v10 = vand.u32 127, %v826_v6  ;;  %v875_v35 = vshrl.u32 %v826_v6, 7 }
 0x199   : > { %v715_v38 = vpack.c.bf16 %v2176_v36, %v2176_v36 }
 0x19a   : > { %v716_v39 = vpack.c.bf16 %v2178_v37, %v2178_v37  ;;  %v828_v12 = vadd.s32 128, %v827_v10  ;;  %vm830_vm7 = vcmp.lt.s32.totalorder %v827_v10, 16  ;;  %v2295_v10 = vld [vmem:[%s2581_s8 + $0x8] sm:$0xff] }
 0x19b   : > { %v738_v40 = vsel %vm647_vm1, %v715_v38, 0  ;;  %vm2204_vm13 = vmand %vm834_vm8, %vm830_vm7  ;;  %v880_v38 = vsub.s32 1, %v875_v35 }
 0x19c   : > { %1634 = vmatprep.subr.msk.bf16.mxu1 %vm647_vm1, %v716_v39  ;;  %vm839_vm9 = vcmp.ge.s32.totalorder %v828_v12, 144  ;;  %v1636_v39 = vld [vmem:[%s2576_s3 + $0x1] ss:$2 sm:$0x3]  ;;  %v1949_v12 = vmov 2  }
 0x19d   : > { %744 = vmatpush1.bf16.msra.mxu1 %v738_v40  ;;  %vm844_vm15 = vmand %vm842_vm10, %vm839_vm9  ;;  %v2229_v40 = vrot.slane %v1636_v39, %v880_v38  ;;  %vm1275_vm10 = vcmask (!%p2194_p3), 7168  }
 0x1a0   : > { %1635 = vmatmul.mubr.msk.bf16.vlgmr.msra.gmra.mrb[0].mxu1 %vm643_vm2, %v1780_v41  ;;  %vm860_vm2 = vcmask 1047808  }
 0x273   : > { %v777_v43 = vpop.f32.mrb[0].mxu1 }
 0x274   : > { %v778_v45 = vadd.f32 %v777_v43, %v722_v42  ;;  %v779_v46 = vpop.f32.mrb[1].mxu1 }
 0x275   : > { %v780_v47 = vadd.f32 %v779_v46, %v722_v42  ;;  %v781_v48 = vpop.f32.mrb[2].mxu1 }
 0x276   : > { %v786_v49 = vand.u32 2147483647, %v778_v45  ;;  %v2198_v50 = vadd.f32 %v781_v48, %v727_v44  ;;  %v783_v51 = vpop.f32.mrb[3].mxu1  ;;  %vm810_vm11 = vcmp.ge.f32.partialorder %v778_v45, 0.0 }
 0x277   : > { %v787_v52 = vand.u32 2147483647, %v780_v47  ;;  %v784_v53 = vadd.f32 %v783_v51, %v727_v44  ;;  %vm811_vm12 = vcmp.ge.f32.partialorder %v780_v47, 0.0  ;;  %v857_v44 = vld [vmem:[%s2576_s3] ss:$2 sm:$0x3] }
 0x278   : > { %v790_v54 = vsub.f32 0.0, %v786_v49  ;;  %v788_v55 = vand.u32 2147483647, %v2198_v50  ;;  %vm812_vm14 = vcmp.ge.f32.partialorder %v2198_v50, 0.0  ;;  %v881_v46 = vrot.slane %v857_v44, %v880_v38 }
 0x279   : > { %v791_v56 = vsub.f32 0.0, %v787_v52  ;;  %v789_v57 = vand.u32 2147483647, %v784_v53  ;;  %vm813_vm1 = vcmp.ge.f32.partialorder %v784_v53, 0.0 }
 0x27a   : > { %v794_v58 = vmul.f32 1.442695, %v790_v54  ;;  %v792_v59 = vsub.f32 0.0, %v788_v55 }
 0x27b   : > { %v796_v60 = vmul.f32 1.442695, %v791_v56  ;;  %v793_v61 = vsub.f32 0.0, %v789_v57 }
 0x27c   : > { %1785 = vpow2.f32 %v794_v58  ;;  %v798_v62 = vmul.f32 1.442695, %v792_v59 }
 0x27d   : > { %1787 = vpow2.f32 %v796_v60  ;;  %v800_v63 = vmul.f32 1.442695, %v793_v61 }
 0x27e   : > { %1789 = vpow2.f32 %v798_v62 }
 0x27f   : > { %1791 = vpow2.f32 %v800_v63 }
 0x286   : > { %v1786_v1 = vpop.eup %1785 }
 0x287   : > { %v1788_v2 = vpop.eup %1787  ;;  %v802_v3 = vadd.f32 1.0, %v1786_v1 }
 0x288   : > { %v1790_v4 = vpop.eup %1789  ;;  %v803_v5 = vadd.f32 1.0, %v1788_v2 }
 0x289   : > { %v1792_v7 = vpop.eup %1791  ;;  %1793 = vrcp.f32 %v802_v3  ;;  %v804_v8 = vadd.f32 1.0, %v1790_v4 }
 0x28a   : > { %1795 = vrcp.f32 %v803_v5  ;;  %v805_v9 = vadd.f32 1.0, %v1792_v7 }
 0x28b   : > { %1797 = vrcp.f32 %v804_v8  ;;  %v2285_v8 = vld [vmem:[%s2581_s8] sm:$0xff] }
 0x28c   : > { %1799 = vrcp.f32 %v805_v9 }
 0x293   : > { %v1794_v14 = vpop.eup %1793 }
 0x294   : > { %v1796_v15 = vpop.eup %1795  ;;  %v814_v16 = vsub.f32 1.0, %v1794_v14 }
 0x295   : > { %v1798_v17 = vpop.eup %1797  ;;  %v815_v18 = vsub.f32 1.0, %v1796_v15 }
 0x296   : > { %v1800_v19 = vpop.eup %1799  ;;  %v818_v20 = vsel %vm810_vm11, %v1794_v14, %v814_v16  ;;  %v816_v22 = vsub.f32 1.0, %v1798_v17  ;;  %v1951_v14 = vmov 7   ;;  %v1953_v16 = vmov 4  }
 0x297   : > { %v822_v23 = vmul.f32 %v818_v20, %v778_v45  ;;  %v819_v24 = vsel %vm811_vm12, %v1796_v15, %v815_v18  ;;  %v817_v25 = vsub.f32 1.0, %v1800_v19  ;;  %v1952_v15 = vmov 8  }
 0x298   : > { %v823_v26 = vmul.f32 %v819_v24, %v780_v47  ;;  %v820_v27 = vsel %vm812_vm14, %v1798_v17, %v816_v22  ;;  %v1954_v17 = vmov 5  }
 0x299   : > { %v821_v28 = vsel %vm813_vm1, %v1800_v19, %v817_v25  ;;  %v2211_v29 = vsel %vm2204_vm13, 0.0, %v822_v23  ;;  %v824_v30 = vmul.f32 %v820_v27, %v2198_v50 }
 0x29a   : > { %v825_v31 = vmul.f32 %v821_v28, %v784_v53  ;;  %861 = vrot.lane.b32.xlu1 %v2211_v29, %s1945_s29  ;;  %v2216_v32 = vsel %vm844_vm15, 0.0, %v823_v26  ;;  %v2260_v53 = vsub.s32 0, %v875_v35 }
 0x29b   : > { %v2222_v34 = vsel %vm2204_vm13, 0.0, %v824_v30 }
 0x29c   : > { %v2218_v33 = vsel %vm844_vm15, 0.0, %v825_v31  ;;  %v877_v55 = vrot.slane %v857_v44, %v2260_v53  ;;  %v911_v59 = vrot.slane %v1636_v39, %v2260_v53  ;;  %v1956_v39 = vmov 3  }
 0x29e   : > { %864 = vrot.lane.b32.xlu1 %v2222_v34, %s1945_s29 }
 0x30c   : > { %v862_v41 = vpop.permute.xlu1 %861 }
 0x30d   : > { %v2233_v42 = vsel %vm860_vm2, %v862_v41, %v2216_v32 }
 0x30e   : > { %867 = vrot.lane.b32.xlu0 %v2233_v42, %s1945_s29 }
 0x310   : > { %v865_v43 = vpop.permute.xlu1 %864 }
 0x311   : > { %v2242_v45 = vsel %vm860_vm2, %v865_v43, %v2218_v33 }
 0x312   : > { %888 = vrot.lane.b32.xlu0 %v2233_v42, %s1946_s0  ;;  %869 = vrot.lane.b32.xlu1 %v2242_v45, %s1945_s29 }
 0x316   : > { %920 = vrot.lane.b32.xlu0 %v2211_v29, %s1947_s17  ;;  %922 = vrot.lane.b32.xlu1 %v2233_v42, %s1947_s17 }
 0x31a   : > { %892 = vrot.lane.b32.xlu0 %v2242_v45, %s1946_s0 }
 0x31e   : > { %924 = vrot.lane.b32.xlu0 %v2222_v34, %s1947_s17 }
 0x380   : > { %v868_v47 = vpop.permute.xlu0 %867 }
 0x381   : > { %v2252_v48 = vsel %vm860_vm2, %v868_v47, %v862_v41 }
 0x382   : > { %890 = vrot.lane.b32.xlu1 %v2252_v48, %s1946_s0 }
 0x384   : > { %v870_v49 = vpop.permute.xlu1 %869  ;;  %v889_v51 = vpop.permute.xlu0 %888 }
 0x385   : > { %v2256_v50 = vsel %vm860_vm2, %v870_v49, %v865_v43  ;;  %v1215_v43 = vld [vmem:[%s2582_s9 + $0x8] sm:$0xff] }
 0x386   : > { %894 = vrot.lane.b32.xlu1 %v2256_v50, %s1946_s0  ;;  %s591_s0 = scalar_lea.vmem [#allocation3], %s2144_s20 }
 0x388   : > { %v923_v52 = vpop.permute.xlu1 %922  ;;  %v921_v54 = vpop.permute.xlu0 %920 }
 0x389   : > { %v929_v62 = vsel %vm928_vm4, %v921_v54, %v923_v52  ;;  %v2313_v19 = vmul.f32 %v923_v52, %v2229_v40 }
 0x38a   : > { %926 = vrot.lane.b32.xlu1 %v2242_v45, %s1947_s17  ;;  %v2273_v3 = vmul.f32 %v929_v62, %v911_v59 }
 0x38c   : > { %v893_v60 = vpop.permute.xlu0 %892 }
 0x390   : > { %v925_v5 = vpop.permute.xlu0 %924 }
 0x3f4   : > { %v891_v56 = vpop.permute.xlu1 %890 }
 0x3f5   : > { %v897_v57 = vsel %vm896_vm3, %v889_v51, %v891_v56  ;;  %v2263_v58 = vmul.f32 %v891_v56, %v881_v46 }
 0x3f6   : > { %v2266_v61 = vmul.f32 %v897_v57, %v877_v55 }
 0x3f8   : > { %v895_v63 = vpop.permute.xlu1 %894  ;;  %985 = vrot.lane.b32.xlu0 %v2266_v61, %s1945_s29 }
 0x3f9   : > { %v898_v1 = vsel %vm896_vm3, %v893_v60, %v895_v63  ;;  %v2271_v2 = vmul.f32 %v895_v63, %v881_v46 }
 0x3fa   : > { %v2275_v4 = vmul.f32 %v898_v1, %v877_v55 }
 0x3fc   : > { %v927_v6 = vpop.permute.xlu1 %926  ;;  %1066 = vrot.lane.b32.xlu0 %v2273_v3, %s1945_s29  ;;  %988 = vrot.lane.b32.xlu1 %v2275_v4, %s1945_s29 }
 0x3fd   : > { %v930_v7 = vsel %vm928_vm4, %v925_v5, %v927_v6  ;;  %v2330_v24 = vmul.f32 %v927_v6, %v2229_v40 }
 0x3fe   : > { %v2287_v9 = vmul.f32 %v930_v7, %v911_v59 }
 0x400   : > { %998 = vperm.xlu0 %1762, %v2285_v8   ;;  %1069 = vrot.lane.b32.xlu1 %v2287_v9, %s1945_s29 }
 0x404   : > { %1763 = vset.pattern.permute.xlu0 %v1948_v11  ;;  %1002 = vperm.xlu1 %1761, %v2295_v10  }
 0x405   : > { %1033 = vperm.xlu0 %1763, %v2285_v8  }
 0x408   : > { %1764 = vset.pattern.permute.xlu1 %v1948_v11 }
 0x409   : > { %1766 = vset.pattern.permute.xlu0 %v1949_v12  ;;  %1037 = vperm.xlu1 %1764, %v2295_v10  }
 0x40a   : > { %1083 = vperm.xlu0 %1766, %v2295_v10  }
 0x40d   : > { %1765 = vset.pattern.permute.xlu1 %v1949_v12 }
 0x40e   : > { %1767 = vset.pattern.permute.xlu0 %v1950_v13  ;;  %1079 = vperm.xlu1 %1765, %v2285_v8  }
 0x40f   : > { %1113 = vperm.xlu0 %1767, %v2285_v8  }
 0x412   : > { %1768 = vset.pattern.permute.xlu1 %v1950_v13 }
 0x413   : > { %1770 = vset.pattern.permute.xlu0 %v1951_v14  ;;  %1117 = vperm.xlu1 %1768, %v2295_v10  }
 0x414   : > { %1151 = vperm.xlu0 %1770, %v2295_v10  }
 0x417   : > { %1769 = vset.pattern.permute.xlu1 %v1951_v14 }
 0x418   : > { %1771 = vset.pattern.permute.xlu0 %v1952_v15  ;;  %1147 = vperm.xlu1 %1769, %v2285_v8  }
 0x419   : > { %1181 = vperm.xlu0 %1771, %v2285_v8  }
 0x41c   : > { %1772 = vset.pattern.permute.xlu1 %v1952_v15 }
 0x41d   : > { %1774 = vset.pattern.permute.xlu0 %v1953_v16 }
 0x41e   : > { %946 = vperm.xlu0 %1774, %v2295_v10  }
 0x422   : > { %1776 = vset.pattern.permute.xlu0 %v1954_v17 }
 0x423   : > { %970 = vperm.xlu0 %1776, %v2285_v8  }
 0x427   : > { %1779 = vset.pattern.permute.xlu0 %v1943_v0 }
 0x46a   : > { %v2310_v18 = vpop.permute.xlu0 %985 }
 0x46b   : > { %v987_v26 = vsel %vm860_vm2, %v2310_v18, %v2263_v58 }
 0x46e   : > { %v2315_v20 = vpop.permute.xlu1 %988  ;;  %v2317_v21 = vpop.permute.xlu0 %1066 }
 0x46f   : > { %v2322_v22 = vsel %vm860_vm2, %v2317_v21, %v2313_v19  ;;  %v990_v28 = vsel %vm860_vm2, %v2315_v20, %v2271_v2 }
 0x470   : > { %1072 = vrot.lane.b32.xlu1 %v2322_v22, %s1945_s29 }
 0x472   : > { %v2326_v23 = vpop.permute.xlu1 %1069 }
 0x473   : > { %v2335_v25 = vsel %vm860_vm2, %v2326_v23, %v2330_v24 }
 0x474   : > { %1185 = vperm.xlu1 %1772, %v2295_v10  }
 0x478   : > { %1074 = vrot.lane.b32.xlu1 %v2335_v25, %s1945_s29 }
 0x479   : > { %1773 = vset.pattern.permute.xlu1 %v1953_v16 }
 0x47c   : > { %991 = vrot.lane.b32.xlu1 %v987_v26, %s1945_s29 }
 0x47f   : > { %v2343_v27 = vpop.permute.xlu0 %998 }
 0x480   : > { %993 = vrot.lane.b32.xlu1 %v990_v28, %s1945_s29  ;;  %v1005_v62 = vmul.f32 %v2343_v27, %v987_v26 }
 0x483   : > { %v2349_v30 = vpop.permute.xlu1 %1002 }
 0x484   : > { %941 = vperm.xlu1 %1773, %v2285_v8   ;;  %v1034_v31 = vpop.permute.xlu0 %1033  ;;  %v1007_v1 = vmul.f32 %v2349_v30, %v990_v28 }
 0x485   : > { %v1041_v35 = vmul.f32 %v1034_v31, %v2252_v48 }
 0x487   : > { %1050 = vrot.lane.b32.xlu0 %v1041_v35, %s1955_s14 }
 0x488   : > { %v1038_v38 = vpop.permute.xlu1 %1037  ;;  %1775 = vset.pattern.permute.xlu1 %v1956_v39 }
 0x489   : > { %v1043_v40 = vmul.f32 %v1038_v38, %v2256_v50  ;;  %954 = vperm.xlu1 %1775, %v2285_v8   ;;  %v1084_v41 = vpop.permute.xlu0 %1083  ;;  %v1040_v50 = vmul.f32 %v1034_v31, %v2233_v42  ;;  %v1042_v51 = vmul.f32 %v1038_v38, %v2242_v45 }
 0x48a   : > { %v1088_v54 = vmul.f32 %v1084_v41, %v2335_v25 }
 0x48b   : > { %1054 = vrot.lane.b32.xlu0 %v1043_v40, %s1955_s14 }
 0x48d   : > { %v1080_v44 = vpop.permute.xlu1 %1079  ;;  %958 = vperm.xlu1 %1775, %v2295_v10  }
 0x48e   : > { %v1114_v46 = vpop.permute.xlu0 %1113  ;;  %v1086_v52 = vmul.f32 %v1080_v44, %v2322_v22 }
 0x48f   : > { %v1121_v47 = vmul.f32 %v1114_v46, %v987_v26  ;;  %1223 = vperm.xlu0 %1779, %v1215_v43   ;;  %v1120_v55 = vmul.f32 %v1114_v46, %v2266_v61 }
 0x491   : > { %1777 = vset.pattern.permute.xlu1 %v1954_v17 }
 0x492   : > { %v1118_v48 = vpop.permute.xlu1 %1117  ;;  %974 = vperm.xlu1 %1777, %v2295_v10  }
 0x493   : > { %v1123_v49 = vmul.f32 %v1118_v48, %v990_v28  ;;  %v1122_v56 = vmul.f32 %v1118_v48, %v2275_v4  ;;  %v1152_v63 = vpop.permute.xlu0 %1151 }
 0x494   : > { %v1157_v5 = vmul.f32 %v1152_v63, %v2242_v45 }
 0x496   : > { %1048 = vrot.lane.b32.xlu1 %v1040_v50, %s1955_s14 }
 0x497   : > { %1778 = vset.pattern.permute.xlu1 %v1943_v0  ;;  %v1214_v0 = vld [vmem:[%s2582_s9] sm:$0xff]  ;;  %v1148_v57 = vpop.permute.xlu1 %1147 }
 0x498   : > { %v1154_v59 = vmul.f32 %v1148_v57, %v2211_v29  ;;  %v1155_v60 = vmul.f32 %v1148_v57, %v2233_v42  ;;  %v1182_v6 = vpop.permute.xlu0 %1181 }
 0x499   : > { %v1189_v7 = vmul.f32 %v1182_v6, %v2322_v22 }
 0x49a   : > { %1052 = vrot.lane.b32.xlu1 %v1042_v51, %s1955_s14 }
 0x49d   : > { %v947_v39 = vpop.permute.xlu0 %946 }
 0x49e   : > { %1094 = vrot.lane.b32.xlu1 %v1086_v52, %s1955_s14 }
 0x4a2   : > { %1098 = vrot.lane.b32.xlu1 %v1088_v54, %s1955_s14 }
 0x4a6   : > { %1128 = vrot.lane.b32.xlu1 %v1120_v55, %s1955_s14 }
 0x4aa   : > { %1132 = vrot.lane.b32.xlu1 %v1122_v56, %s1955_s14 }
 0x4ae   : > { %1218 = vperm.xlu1 %1778, %v1214_v0  }
 0x4b2   : > { %1162 = vrot.lane.b32.xlu1 %v1154_v59, %s1955_s14 }
 0x4b6   : > { %1164 = vrot.lane.b32.xlu1 %v1155_v60, %s1955_s14 }
 0x4ba   : > { %1013 = vrot.lane.b32.xlu1 %v1005_v62, %s1955_s14 }
 0x4be   : > { %1017 = vrot.lane.b32.xlu1 %v1007_v1, %s1955_s14 }
 0x4c2   : > { %1168 = vrot.lane.b32.xlu1 %v1157_v5, %s1955_s14 }
 0x4c6   : > { %1198 = vrot.lane.b32.xlu1 %v1189_v7, %s1955_s14 }
 0x4e2   : > { %v1073_v42 = vpop.permute.xlu1 %1072 }
 0x4e3   : > { %v1076_v8 = vsel %vm860_vm2, %v1073_v42, %v2317_v21 }
 0x4e4   : > { %v1087_v10 = vmul.f32 %v1080_v44, %v1076_v8 }
 0x4e6   : > { %1096 = vrot.lane.b32.xlu0 %v1087_v10, %s1955_s14 }
 0x4ea   : > { %1130 = vrot.lane.b32.xlu0 %v1121_v47, %s1955_s14 }
 0x4f3   : > { %v1186_v11 = vpop.permute.xlu1 %1185 }
 0x4f4   : > { %v1191_v12 = vmul.f32 %v1186_v11, %v2335_v25  ;;  %v1190_v26 = vmul.f32 %v1186_v11, %v2287_v9 }
 0x4f6   : > { %1202 = vrot.lane.b32.xlu1 %v1191_v12, %s1955_s14 }
 0x4f7   : > { %v1075_v45 = vpop.permute.xlu1 %1074 }
 0x4f8   : > { %v1077_v13 = vsel %vm860_vm2, %v1075_v45, %v2326_v23  ;;  %v1156_v23 = vmul.f32 %v1152_v63, %v2222_v34 }
 0x4f9   : > { %v1089_v14 = vmul.f32 %v1084_v41, %v1077_v13  ;;  %v971_v41 = vpop.permute.xlu0 %970 }
 0x4fa   : > { %v978_v5 = vmul.f32 %v971_v41, %v2313_v19  ;;  %v977_v7 = vmul.f32 %v971_v41, %v2273_v3 }
 0x4fb   : > { %v992_v15 = vpop.permute.xlu1 %991  ;;  %1100 = vrot.lane.b32.xlu0 %v1089_v14, %s1955_s14 }
 0x4fc   : > { %v995_v16 = vsel %vm860_vm2, %v992_v15, %v2310_v18  ;;  %v1188_v18 = vmul.f32 %v1182_v6, %v2273_v3 }
 0x4fd   : > { %v1006_v21 = vmul.f32 %v2343_v27, %v995_v16  ;;  %v1051_v44 = vpop.permute.xlu0 %1050 }
 0x4ff   : > { %v994_v17 = vpop.permute.xlu1 %993  ;;  %1134 = vrot.lane.b32.xlu0 %v1123_v49, %s1955_s14 }
 0x500   : > { %v996_v22 = vsel %vm860_vm2, %v994_v17, %v2315_v20 }
 0x501   : > { %v1008_v25 = vmul.f32 %v2349_v30, %v996_v22  ;;  %v1055_v47 = vpop.permute.xlu0 %1054 }
 0x503   : > { %1015 = vrot.lane.b32.xlu0 %v1006_v21, %s1955_s14  ;;  %v942_v27 = vpop.permute.xlu1 %941 }
 0x504   : > { %v950_v59 = vmul.f32 %v942_v27, %v2216_v32  ;;  %v949_v60 = vmul.f32 %v942_v27, %v2211_v29  ;;  %v951_v32 = vmul.f32 %v947_v39, %v2222_v34 }
 0x507   : > { %1019 = vrot.lane.b32.xlu0 %v1008_v25, %s1955_s14 }
 0x508   : > { %v955_v20 = vpop.permute.xlu1 %954 }
 0x509   : > { %v962_v55 = vmul.f32 %v955_v20, %v2263_v58  ;;  %v961_v56 = vmul.f32 %v955_v20, %v2266_v61  ;;  %v952_v61 = vmul.f32 %v947_v39, %v2218_v33 }
 0x50b   : > { %1166 = vrot.lane.b32.xlu0 %v1156_v23, %s1955_s14  ;;  %v966_v62 = vadd.f32 %v962_v55, %v950_v59  ;;  %v965_v63 = vadd.f32 %v961_v56, %v949_v60 }
 0x50c   : > { %v959_v28 = vpop.permute.xlu1 %958 }
 0x50d   : > { %v964_v6 = vmul.f32 %v959_v28, %v2271_v2  ;;  %v963_v42 = vmul.f32 %v959_v28, %v2275_v4  ;;  %v982_v10 = vadd.f32 %v978_v5, %v966_v62  ;;  %v981_v11 = vadd.f32 %v977_v7, %v965_v63 }
 0x50e   : > { %v2416_v49 = vpop.permute.xlu0 %1223 }
 0x50f   : > { %1196 = vrot.lane.b32.xlu0 %v1188_v18, %s1955_s14  ;;  %v968_v19 = vadd.f32 %v964_v6, %v952_v61  ;;  %v967_v3 = vadd.f32 %v963_v42, %v951_v32 }
 0x511   : > { %v975_v31 = vpop.permute.xlu1 %974 }
 0x512   : > { %v980_v8 = vmul.f32 %v975_v31, %v2330_v24  ;;  %v979_v29 = vmul.f32 %v975_v31, %v2287_v9 }
 0x513   : > { %1200 = vrot.lane.b32.xlu0 %v1190_v26, %s1955_s14 }
 0x514   : > { %v984_v33 = vadd.f32 %v980_v8, %v968_v19  ;;  %v983_v15 = vadd.f32 %v979_v29, %v967_v3 }
 0x515   : > { %v1049_v35 = vpop.permute.xlu1 %1048 }
 0x516   : > { %v1056_v4 = vsel %vm1021_vm5, %v1049_v35, %v1051_v44 }
 0x519   : > { %v1053_v30 = vpop.permute.xlu1 %1052 }
 0x51a   : > { %v1057_v18 = vsel %vm1021_vm5, %v1053_v30, %v1055_v47 }
 0x51d   : > { %v1095_v38 = vpop.permute.xlu1 %1094 }
 0x521   : > { %v1099_v40 = vpop.permute.xlu1 %1098 }
 0x525   : > { %v1129_v43 = vpop.permute.xlu1 %1128 }
 0x529   : > { %v1133_v46 = vpop.permute.xlu1 %1132 }
 0x52d   : > { %v2414_v48 = vpop.permute.xlu1 %1218 }
 0x531   : > { %v1163_v50 = vpop.permute.xlu1 %1162 }
 0x535   : > { %v1165_v52 = vpop.permute.xlu1 %1164 }
 0x536   : > { %v1170_v55 = vsel %vm1021_vm5, %v1163_v50, %v1165_v52 }
 0x539   : > { %v1014_v0 = vpop.permute.xlu1 %1013 }
 0x53d   : > { %v1018_v58 = vpop.permute.xlu1 %1017 }
 0x541   : > { %v1169_v24 = vpop.permute.xlu1 %1168 }
 0x558   : > { %v1097_v51 = vpop.permute.xlu0 %1096 }
 0x559   : > { %v1102_v34 = vsel %vm1021_vm5, %v1095_v38, %v1097_v51  ;;  %v1199_v38 = vpop.permute.xlu1 %1198 }
 0x55c   : > { %v1131_v54 = vpop.permute.xlu0 %1130 }
 0x55d   : > { %v1136_v26 = vsel %vm1021_vm5, %v1129_v43, %v1131_v54 }
 0x568   : > { %v1203_v63 = vpop.permute.xlu1 %1202 }
 0x56d   : > { %v1101_v57 = vpop.permute.xlu0 %1100 }
 0x56e   : > { %v1103_v39 = vsel %vm1021_vm5, %v1099_v40, %v1101_v57 }
 0x571   : > { %v1135_v1 = vpop.permute.xlu0 %1134 }
 0x572   : > { %v1137_v56 = vsel %vm1021_vm5, %v1133_v46, %v1135_v1 }
 0x575   : > { %v1016_v12 = vpop.permute.xlu0 %1015 }
 0x576   : > { %v1022_v2 = vsel %vm1021_vm5, %v1014_v0, %v1016_v12  ;;  %v1029_v45 = vadd.f32 %v1016_v12, %v982_v10 }
 0x577   : > { %v1028_v13 = vadd.f32 %v1022_v2, %v981_v11 }
 0x578   : > { %v1063_v14 = vadd.f32 %v1051_v44, %v1029_v45 }
 0x579   : > { %v1062_v16 = vadd.f32 %v1056_v4, %v1028_v13  ;;  %v1020_v17 = vpop.permute.xlu0 %1019 }
 0x57a   : > { %v1109_v9 = vadd.f32 %v1097_v51, %v1063_v14  ;;  %v1023_v21 = vsel %vm1021_vm5, %v1018_v58, %v1020_v17  ;;  %v1031_v22 = vadd.f32 %v1020_v17, %v984_v33 }
 0x57b   : > { %v1108_v25 = vadd.f32 %v1102_v34, %v1062_v16  ;;  %v1030_v23 = vadd.f32 %v1023_v21, %v983_v15 }
 0x57c   : > { %v1143_v27 = vadd.f32 %v1131_v54, %v1109_v9  ;;  %v1065_v20 = vadd.f32 %v1055_v47, %v1031_v22 }
 0x57d   : > { %v1064_v28 = vadd.f32 %v1057_v18, %v1030_v23  ;;  %v1167_v31 = vpop.permute.xlu0 %1166  ;;  %v1142_v35 = vadd.f32 %v1136_v26, %v1108_v25 }
 0x57e   : > { %v1177_v41 = vadd.f32 %v1165_v52, %v1143_v27  ;;  %v1111_v44 = vadd.f32 %v1101_v57, %v1065_v20  ;;  %v1171_v6 = vsel %vm1021_vm5, %v1167_v31, %v1169_v24 }
 0x57f   : > { %v1110_v51 = vadd.f32 %v1103_v39, %v1064_v28  ;;  %v1176_v60 = vadd.f32 %v1170_v55, %v1142_v35 }
 0x580   : > { %v1211_v0 = vadd.f32 %v1199_v38, %v1177_v41  ;;  %v1145_v59 = vadd.f32 %v1135_v1, %v1111_v44  ;;  %v1957_v41 = vmov (!%p2194_p3), 0.0  }
 0x581   : > { %v1144_v30 = vadd.f32 %v1137_v56, %v1110_v51  ;;  %v1197_v43 = vpop.permute.xlu0 %1196  ;;  %1276 = vst.msk [vmem:[#allocation2] sm:$0xff] (!%p2194_p3), %vm1275_vm10, %v1957_v41  ;;  %1277 = vst.msk [vmem:[#allocation2 + $0x8] sm:$0xff] (!%p2194_p3), %vm1275_vm10, %v1957_v41 }
 0x582   : > { %v1227_v47 = vadd.f32 %v2414_v48, %v1211_v0  ;;  %v1179_v54 = vadd.f32 %v1169_v24, %v1145_v59  ;;  %v1204_v62 = vsel %vm1021_vm5, %v1197_v43, %v1199_v38 }
 0x583   : > { %v1210_v40 = vadd.f32 %v1204_v62, %v1176_v60  ;;  %v1178_v7 = vadd.f32 %v1171_v6, %v1144_v30 }
 0x584   : > { %v1231_v5 = vand.u32 2147483647, %v1227_v47  ;;  %v1213_v57 = vadd.f32 %v1203_v63, %v1179_v54  ;;  %vm1255_vm6 = vcmp.ge.f32.partialorder %v1227_v47, 0.0 }
 0x585   : > { %v1226_v50 = vadd.f32 %v2414_v48, %v1210_v40  ;;  %v1201_v46 = vpop.permute.xlu0 %1200 }
 0x586   : > { %v1235_v52 = vsub.f32 0.0, %v1231_v5  ;;  %v1229_v1 = vadd.f32 %v2416_v49, %v1213_v57  ;;  %v1205_v42 = vsel %vm1021_vm5, %v1201_v46, %v1203_v63 }
 0x587   : > { %v1230_v58 = vand.u32 2147483647, %v1226_v50  ;;  %v1212_v61 = vadd.f32 %v1205_v42, %v1178_v7  ;;  %vm1254_vm7 = vcmp.ge.f32.partialorder %v1226_v50, 0.0 }
 0x588   : > { %v1240_v8 = vmul.f32 1.442695, %v1235_v52  ;;  %v1233_v10 = vand.u32 2147483647, %v1229_v1  ;;  %vm1257_vm8 = vcmp.ge.f32.partialorder %v1229_v1, 0.0 }
 0x589   : > { %v1234_v32 = vsub.f32 0.0, %v1230_v58  ;;  %v1228_v29 = vadd.f32 %v2416_v49, %v1212_v61 }
 0x58a   : > { %1801 = vpow2.f32 %v1240_v8  ;;  %v1237_v11 = vsub.f32 0.0, %v1233_v10 }
 0x58b   : > { %v1238_v12 = vmul.f32 1.442695, %v1234_v32  ;;  %v1232_v19 = vand.u32 2147483647, %v1228_v29  ;;  %vm1256_vm9 = vcmp.ge.f32.partialorder %v1228_v29, 0.0 }
 0x58c   : > { %v1244_v2 = vmul.f32 1.442695, %v1237_v11 }
 0x58d   : > { %1803 = vpow2.f32 %v1238_v12  ;;  %v1236_v48 = vsub.f32 0.0, %v1232_v19 }
 0x58e   : > { %1805 = vpow2.f32 %v1244_v2 }
 0x58f   : > { %v1242_v45 = vmul.f32 1.442695, %v1236_v48 }
 0x591   : > { %1807 = vpow2.f32 %v1242_v45 }
 0x594   : > { %v1802_v3 = vpop.eup %1801 }
 0x595   : > { %v1247_v13 = vadd.f32 1.0, %v1802_v3 }
 0x597   : > { %v1804_v4 = vpop.eup %1803  ;;  %1809 = vrcp.f32 %v1247_v13 }
 0x598   : > { %v1806_v14 = vpop.eup %1805  ;;  %v1246_v33 = vadd.f32 1.0, %v1804_v4 }
 0x599   : > { %v1249_v15 = vadd.f32 1.0, %v1806_v14 }
 0x59a   : > { %1811 = vrcp.f32 %v1246_v33 }
 0x59b   : > { %v1808_v24 = vpop.eup %1807  ;;  %1813 = vrcp.f32 %v1249_v15 }
 0x59c   : > { %v1248_v49 = vadd.f32 1.0, %v1808_v24 }
 0x59e   : > { %1815 = vrcp.f32 %v1248_v49 }
 0x5a1   : > { %v1810_v16 = vpop.eup %1809 }
 0x5a2   : > { %v1259_v17 = vsub.f32 1.0, %v1810_v16 }
 0x5a4   : > { %v1812_v34 = vpop.eup %1811  ;;  %v1263_v9 = vsel %vm1255_vm6, %v1810_v16, %v1259_v17 }
 0x5a5   : > { %v1814_v21 = vpop.eup %1813  ;;  %v2446_v22 = vmul.f32 %v1263_v9, %v1227_v47  ;;  %v1258_v25 = vsub.f32 1.0, %v1812_v34 }
 0x5a6   : > { %v1261_v23 = vsub.f32 1.0, %v1814_v21  ;;  %1274 = sbr.rel (%p2194_p3) target bundleno = 1453 (0x5ad), region = 88 }
 0x5a7   : > { %v1262_v18 = vsel %vm1254_vm7, %v1812_v34, %v1258_v25 }
 0x5a8   : > { %v1816_v26 = vpop.eup %1815  ;;  %v1265_v27 = vsel %vm1257_vm8, %v1814_v21, %v1261_v23  ;;  %v2448_v20 = vmul.f32 %v1262_v18, %v1226_v50 }
 0x5a9   : > { %v2450_v28 = vmul.f32 %v1265_v27, %v1229_v1  ;;  %v1260_v31 = vsub.f32 1.0, %v1816_v26 }
 0x5ab   : > { %v1264_v35 = vsel %vm1256_vm9, %v1816_v26, %v1260_v31 }
 0x5ac   : > { %v2452_v39 = vmul.f32 %v1264_v35, %v1228_v29 }
 0x5ad PF: > { %p1637_p6 = scmp.ne.s32.totalorder %s1921_s25, 0 }
 0x5ae   : > { %s1958_s17 = smov (!%p1637_p6), 112   ;;  %v1282_v59 = vld [vmem:[#allocation2 + $0x8] sm:$0xff] (!%p1637_p6)  ;;  %v1281_v30 = vld [vmem:[#allocation2] sm:$0xff] (!%p1637_p6)  ;;  %vm1305_vm11 = vcmask (!%p1637_p6), 7168  }
 0x5af   : > { %1280 = sbr.rel (%p1637_p6) target bundleno = 1720 (0x6b8), region = 92  ;;  %1291 = vrot.lane.b32.xlu1 (!%p1637_p6), %v2452_v39, %s1958_s17  ;;  %1287 = vrot.lane.b32.xlu0 (!%p1637_p6), %v2448_v20, %s1958_s17 }
 0x5b3   : > { %1293 = vrot.lane.b32.xlu1 (!%p1637_p6), %v2450_v28, %s1958_s17  ;;  %1289 = vrot.lane.b32.xlu0 (!%p1637_p6), %v2446_v22, %s1958_s17 }
 0x621   : > { %v1292_v44 = vpop.permute.xlu1 %1291  ;;  %v1288_v38 = vpop.permute.xlu0 %1287 }
 0x625   : > { %v1294_v51 = vpop.permute.xlu1 %1293  ;;  %v1290_v55 = vpop.permute.xlu0 %1289 }
 0x626   : > { %v1296_v56 = vsel %vm1021_vm5, %v1292_v44, %v1294_v51  ;;  %v1295_v0 = vsel %vm1021_vm5, %v1288_v38, %v1290_v55 }
 0x627   : > { %1301 = vadd.xlane.f32.xlu1 %v1296_v56  ;;  %1299 = vadd.xlane.f32.xlu0 %v1295_v0 }
 0x6b4   : > { %v1302_v60 = vpop.xlane.xlu1 %1301  ;;  %v1300_v43 = vpop.xlane.xlu0 %1299 }
 0x6b5   : > { %v1304_v47 = vadd.f32 %v1302_v60, %v1282_v59  ;;  %v1303_v54 = vadd.f32 %v1300_v43, %v1281_v30 }
 0x6b7   : > { %1307 = vst.msk [vmem:[#allocation2 + $0x8] sm:$0xff] %vm1305_vm11, %v1304_v47  ;;  %1306 = vst.msk [vmem:[#allocation2] sm:$0xff] %vm1305_vm11, %v1303_v54 }
 0x6b8 PF: > { %p1308_p8 = scmp.eq.s32.totalorder %s1921_s25, 1 }
 0x6ba   : > { %p1309_p9 = pnand %p1308_p8, %p829_p1 }
 0x6bb   : > { %v1959_v40 = vmov (!%p1309_p9), 0   ;;  %v1317_v6 = vld [vmem:[%s2583_s10] sm:$0xff] (!%p1309_p9)  ;;  %v1318_v50 = vld [vmem:[%s2583_s10 + $0x8] sm:$0xff] (!%p1309_p9)  ;;  %vm1331_vm12 = vcmask (!%p1309_p9), 15360   ;;  %vm1389_vm14 = vcmask (!%p1309_p9), 7168  }
 0x6bc   : > { %1312 = sbr.rel (%p1309_p9) target bundleno = 2102 (0x836), region = 96  ;;  %1817 = vset.pattern.permute.xlu0 (!%p1309_p9), %v1959_v40  ;;  %v1341_v12 = vld [vmem:[%s2584_s11] sm:$0x1] (!%p1309_p9)  ;;  %v1354_v17 = vld [vmem:[%s2585_s12 + $0x8] sm:$0xff] (!%p1309_p9) }
 0x6bd   : > { %v1353_v49 = vld [vmem:[%s2585_s12] sm:$0xff] (!%p1309_p9) }
 0x6be   : > { %v1313_v62 = vld [vmem:[#allocation2] sm:$0xff] (!%p1309_p9)  ;;  %v1314_v63 = vld [vmem:[#allocation2 + $0x8] sm:$0xff] (!%p1309_p9) }
 0x6bf   : > { %v1315_v5 = vmul.f32 (!%p1309_p9), 0.00390625, %v1313_v62  ;;  %v1316_v57 = vmul.f32 (!%p1309_p9), 0.00390625, %v1314_v63  ;;  %v1367_v23 = vld [vmem:[%s2586_s13] sm:$0xff] (!%p1309_p9) }
 0x6c1   : > { %1321 = vperm.xlu0 (!%p1309_p9), %1817, %v1315_v5  }
 0x6c5   : > { %1326 = vperm.xlu0 %1817, %v1316_v57  }
 0x740   : > { %v1322_v7 = vpop.permute.xlu0 %1321 }
 0x741   : > { %v1329_v46 = vmul.f32 %v1322_v7, %v1317_v6 }
 0x743   : > { %v1332_v42 = vsel %vm1331_vm12, %v1329_v46, 0.0 }
 0x744   : > { %v1327_v52 = vpop.permute.xlu0 %1326 }
 0x745   : > { %v1330_v1 = vmul.f32 %v1327_v52, %v1318_v50 }
 0x747   : > { %v1333_v58 = vsel %vm1331_vm12, %v1330_v1, 0.0 }
 0x748   : > { %v1334_v61 = vadd.f32 %v1333_v58, %v1332_v42 }
 0x74a   : > { %v1335_v8 = vrot.slane %v1334_v61, 4 }
 0x74c   : > { %v1336_v10 = vadd.f32 %v1335_v8, %v1334_v61 }
 0x74e   : > { %v1337_v32 = vrot.slane %v1336_v10, 2 }
 0x750   : > { %v1338_v29 = vadd.f32 %v1337_v32, %v1336_v10 }
 0x752   : > { %v1339_v11 = vrot.slane %v1338_v29, 1 }
 0x754   : > { %v1340_v19 = vadd.f32 %v1339_v11, %v1338_v29 }
 0x756   : > { %v1342_v2 = vadd.f32 %v1341_v12, %v1340_v19 }
 0x758   : > { %v1343_v48 = vand.u32 2147483647, %v1342_v2  ;;  %vm1349_vm13 = vcmp.ge.f32.partialorder %v1342_v2, 0.0 }
 0x75a   : > { %v1344_v45 = vsub.f32 0.0, %v1343_v48 }
 0x75c   : > { %v1345_v3 = vmul.f32 1.442695, %v1344_v45 }
 0x75e   : > { %1818 = vpow2.f32 %v1345_v3 }
 0x768   : > { %v1819_v13 = vpop.eup %1818 }
 0x769   : > { %v1347_v4 = vadd.f32 1.0, %v1819_v13 }
 0x76b   : > { %1820 = vrcp.f32 %v1347_v4 }
 0x775   : > { %v1821_v14 = vpop.eup %1820 }
 0x776   : > { %v1350_v33 = vsub.f32 1.0, %v1821_v14 }
 0x778   : > { %v1351_v15 = vsel %vm1349_vm13, %v1821_v14, %v1350_v33 }
 0x779   : > { %v1352_v24 = vmul.f32 %v1351_v15, %v1342_v2 }
 0x77b   : > { %v1358_v16 = vrot.slane %v1352_v24, %v2260_v53  ;;  %v1368_v53 = vld [vmem:[%s2586_s13 + $0x8] sm:$0xff] }
 0x77d   : > { %v1359_v34 = vmul.f32 %v1358_v16, %v1353_v49  ;;  %v1360_v21 = vmul.f32 %v1358_v16, %v1354_v17 }
 0x77f   : > { %v1361_v9 = vsel %vm1331_vm12, %v1359_v34, 0.0  ;;  %v1364_v25 = vsel %vm1331_vm12, %v1360_v21, 0.0 }
 0x780   : > { %1362 = vadd.xlane.f32.xlu1 %v1361_v9 }
 0x784   : > { %1365 = vadd.xlane.f32.xlu1 %v1364_v25 }
 0x80d   : > { %v1363_v18 = vpop.xlane.xlu1 %1362 }
 0x80e   : > { %v1369_v26 = vadd.f32 %v1367_v23, %v1363_v18 }
 0x810   : > { %v1371_v27 = vand.u32 2147483647, %v1369_v26  ;;  %vm1383_vm15 = vcmp.ge.f32.partialorder %v1369_v26, 0.0 }
 0x811   : > { %v1366_v31 = vpop.xlane.xlu1 %1365 }
 0x812   : > { %v1373_v35 = vsub.f32 0.0, %v1371_v27  ;;  %v1370_v41 = vadd.f32 %v1368_v53, %v1366_v31 }
 0x814   : > { %v1375_v44 = vmul.f32 1.442695, %v1373_v35  ;;  %v1372_v38 = vand.u32 2147483647, %v1370_v41  ;;  %vm1384_vm1 = vcmp.ge.f32.partialorder %v1370_v41, 0.0 }
 0x816   : > { %1822 = vpow2.f32 %v1375_v44  ;;  %v1374_v51 = vsub.f32 0.0, %v1372_v38 }
 0x818   : > { %v1377_v55 = vmul.f32 1.442695, %v1374_v51 }
 0x81a   : > { %1824 = vpow2.f32 %v1377_v55 }
 0x820   : > { %v1823_v56 = vpop.eup %1822 }
 0x821   : > { %v1379_v0 = vadd.f32 1.0, %v1823_v56 }
 0x823   : > { %1826 = vrcp.f32 %v1379_v0 }
 0x824   : > { %v1825_v59 = vpop.eup %1824 }
 0x825   : > { %v1380_v30 = vadd.f32 1.0, %v1825_v59 }
 0x827   : > { %1828 = vrcp.f32 %v1380_v30 }
 0x82d   : > { %v1827_v60 = vpop.eup %1826 }
 0x82e   : > { %v1385_v43 = vsub.f32 1.0, %v1827_v60 }
 0x830   : > { %v1387_v47 = vsel %vm1383_vm15, %v1827_v60, %v1385_v43 }
 0x831   : > { %v1829_v54 = vpop.eup %1828  ;;  %1390 = vst.msk [vmem:[#allocation2] sm:$0xff] %vm1389_vm14, %v1387_v47 }
 0x832   : > { %v1386_v62 = vsub.f32 1.0, %v1829_v54 }
 0x834   : > { %v1388_v63 = vsel %vm1384_vm1, %v1829_v54, %v1386_v62 }
 0x835   : > { %1391 = vst.msk [vmem:[#allocation2 + $0x8] sm:$0xff] %vm1389_vm14, %v1388_v63 }
 0x836 PF: > { %p1638_p10 = scmp.ne.s32.totalorder %s1921_s25, 1 }
 0x837   : > { %v1960_v5 = vmov (!%p1638_p10), 0   ;;  %s2631_s14 = sld [smem:[#allocation22_spill]] (!%p1638_p10)  ;;  %s1961_s29 = smov (!%p1638_p10), 112   ;;  %v1962_v50 = vmov (!%p1638_p10), 0.0   ;;  %vm1963_vm2 = vmmov (!%p1638_p10), 0  }
 0x838   : > { %1394 = sbr.rel (%p1638_p10) target bundleno = 2581 (0xa15), region = 100  ;;  %v1395_v40 = vld [vmem:[#allocation2] sm:$0xff] (!%p1638_p10)  ;;  %1830 = vset.pattern.permute.xlu0 (!%p1638_p10), %v1960_v5  ;;  %1647 = vmatprep.subr.bf16.mxu0 (!%p1638_p10), %v1962_v50  ;;  %s2632_s21 = sld [smem:[#allocation21_spill]] (!%p1638_p10) }
 0x839   : > { %1399 = vperm.xlu0 (!%p1638_p10), %1830, %v1395_v40   ;;  %1649 = vmatprep.mubr.msk.bf16.mxu0 (!%p1638_p10), %vm1963_vm2, %v1962_v50 }
 0x83c   : > { %v1396_v57 = vld [vmem:[#allocation2 + $0x8] sm:$0xff] (!%p1638_p10) }
 0x83d   : > { %1404 = vperm.xlu0 (!%p1638_p10), %1830, %v1396_v57   ;;  %v1414_v6 = vld [vmem:[%s2631_s14] sm:$0xff] (!%p1638_p10) }
 0x841   : > { %1417 = vperm.xlu0 %1830, %v1414_v6  }
 0x845   : > { %1476 = vrot.lane.b32.xlu0 %v2178_v37, %s1961_s29 }
 0x8b8   : > { %v1400_v7 = vpop.permute.xlu0 %1399 }
 0x8b9   : > { %v1407_v52 = vmul.f32 %v1400_v7, %v2448_v20  ;;  %v1408_v61 = vmul.f32 %v1400_v7, %v2446_v22  ;;  %v1411_v20 = vld [vmem:[%s2632_s21] sm:$0xf] }
 0x8bc   : > { %v1405_v46 = vpop.permute.xlu0 %1404 }
 0x8bd   : > { %v1409_v1 = vmul.f32 %v1405_v46, %v2452_v39  ;;  %v1410_v42 = vmul.f32 %v1405_v46, %v2450_v28 }
 0x8bf   : > { %v1412_v58 = vpack.c.bf16 %v1409_v1, %v1407_v52  ;;  %v1413_v8 = vpack.c.bf16 %v1410_v42, %v1408_v61 }
 0x8c0   : > { %v1418_v28 = vpop.permute.xlu0 %1417 }
 0x8c1   : > { %1422 = vrot.lane.b32.xlu1 %v1412_v58, %s1961_s29 }
 0x8c4   : > { %v1477_v22 = vpop.permute.xlu0 %1476 }
 0x8c5   : > { %1424 = vrot.lane.b32.xlu1 %v1413_v8, %s1961_s29 }
 0x8c9   : > { %1474 = vrot.lane.b32.xlu1 %v2176_v36, %s1961_s29 }
 0x933   : > { %v1423_v37 = vpop.permute.xlu1 %1422 }
 0x937   : > { %v1425_v10 = vpop.permute.xlu1 %1424 }
 0x938   : > { %v1427_v32 = vsel %vm1021_vm5, %v1423_v37, %v1425_v10 }
 0x939   : > { %1648 = vmatpush3.bf16.msra.mxu0 %v1427_v32 }
 0x93b   : > { %v1475_v39 = vpop.permute.xlu1 %1474 }
 0x93c   : > { %1650 = vmatmul.mubr.msk.bf16.vlgmr.msra.gmra.mrb[0].mxu0 %vm629_vm0, %v1411_v20  ;;  %v1478_v11 = vsel %vm1021_vm5, %v1475_v39, %v1477_v22 }
 0xa0f   : > { %v1466_v29 = vpop.f32.mrb[0].mxu0 }
 0xa10   : > { %v1467_v12 = vadd.f32 %v1466_v29, %v1418_v28  ;;  %v1651_v36 = vpop.f32.mrb[1].mxu0 }
 0xa11   : > { %v1469_v19 = vpop.f32.mrb[2].mxu0 }
 0xa12   : > { %v1480_v2 = vadd.f32 %v1478_v11, %v1467_v12  ;;  %v1652_v48 = vpop.f32.mrb[3].mxu0 }
 0xa14   : > { %1481 = vst [vmem:[%s591_s0] sm:$0xff] %v1480_v2 }
 0xa15 PF: > { %s1490_s27 = smul.u32 %s1917_s24, %s1921_s25  ;;  %s1641_s18 = sshll.u32 %s1925_s26, 1 }
 0xa16   : > { %s1499_s19 = sshll.u32 %s591_s0, 4  ;;  %s2634_s28 = sld [smem:[#allocation23_spill]]  ;;  %s2516_s19 = int_to_ptr.vmem [resolvable:$true] %s1499_s19 }
 0xa17   : > { %s1495_s15 = sadd.s32 %s1641_s18, %s1490_s27  ;;  %s2636_s21 = sand.u32 1, %s1909_s22  }
 0xa18   : > { %s1642_s23 = sshll.u32 %s1495_s15, 7  ;;  %s1483_s1 = scalar_lea.sflag [#allocation4], %s2636_s21 }
 0xa19   : > { %s1831_s2 = scalar_lea.vmem %s2516_s19, 128  ;;  %s1964_s24 = smov [#allocation3]  }
 0xa1a   : > { %p1832_p11 = scmp.ne.s32.totalorder %s2516_s19, %s1831_s2  ;;  %s1835_s25 = sshll.u32 %s1964_s24, 4  ;;  %s1836_s25 = int_to_ptr.vmem [resolvable:$false] %s1835_s25 }
 0xa1b   : > { %s1837_s26 = scalar_lea.vmem %s1836_s25, 256  ;;  %p1838_p0 = scmp.lt.s32.totalorder %s2516_s19, %s1836_s25 }
 0xa1c   : > { %s2635_s16 = smov %s2634_s28  ;;  %s1497_s30 = scalar_lea.hbm %s2634_s28, %s1642_s23 }
 0xa1d   : > { %p1833_p12 = pnand %p1832_p11, %p2114_p5  ;;  %p1839_p1 = scmp.lt.s32.totalorder %s1837_s26, %s1831_s2 }
 0xa1f   : > { %p1834_p13 = pneg %p1833_p12  ;;  %p1840_p2 = por %p1839_p1, %p1838_p0 }
 0xa21   : > { %p1841_p3 = pnand %p1840_p2, %p1834_p13 }
 0xa23   : > { %1844 = shalt.err (!%p1841_p3)
}
 0xa24   : > { %s1845_s20 = scalar_lea.hbm %s1497_s30, 128  ;;  %s1849_s18 = scalar_lea.hbm %s2635_s16, 512 }
 0xa25   : > { %p1846_p4 = scmp.ne.s32.totalorder %s1497_s30, %s1845_s20  ;;  %p1850_p9 = scmp.lt.u32.totalorder %s1497_s30, %s2635_s16 }
 0xa26   : > { %p1851_p10 = scmp.lt.u32.totalorder %s1849_s18, %s1845_s20  ;;  %p1853_p12 = scmp.lt.u32.totalorder %s1845_s20, %s1497_s30 }
 0xa27   : > { %p1847_p6 = pnand %p1846_p4, %p2114_p5 }
 0xa28   : > { %p1852_p11 = por %p1851_p10, %p1850_p9 }
 0xa29   : > { %p1848_p8 = pneg %p1847_p6 }
 0xa2a   : > { %p1854_p0 = por %p1853_p12, %p1852_p11 }
 0xa2c   : > { %p1855_p13 = pnand %p1854_p0, %p1848_p8 }
 0xa2e   : > { %1858 = shalt.err (!%p1855_p13)
}
 0xa2f   : > { %1653 = dma.vmem_to_hbm [thread:$0]  (%p2114_p5), %s2516_s19, 128, %s1497_s30, %s1483_s1  }
 0xa30 PF: > { %s2637_s2 = sld [smem:[#allocation11_spill]]  ;;  %s2638_s14 = sld [smem:[#allocation6_spill]] }
 0xa36   : > { %p1659_p1 = scmp.ge.s32.totalorder %s2637_s2, 2  ;;  %s1511_s28 = sand.u32 1, %s2638_s14  }
 0xa37   : > { %s1512_s21 = scalar_lea.sflag [#allocation4], %s1511_s28 }
 0xa38   : > { %p1656_p2 = pnand %p1659_p1, %p2123_p7 }
 0xa3a   : > { %1900 = dma.done.wait (!%p1656_p2), %s1512_s21, 128  }
 0xa3b   : > { %1902 = vsyncadd (!%p1656_p2), %s1512_s21, 4294967168  ;;  %s29_s30 = sadd.s32 1, %s2637_s2   ;;  %s2640_s24 = sld [smem:[#allocation7_spill]] }
 0xa3c   : > { %p26_p3 = scmp.ge.s32.totalorder %s29_s30, 10   ;;  %s2641_s23 = sld [smem:[#allocation17_spill]] }
 0xa3d   : > { %s2642_s17 = sld [smem:[#allocation8_spill]]  ;;  %s2643_s25 = sld [smem:[#allocation9_spill]] }
 0xa3e   : > { %s2644_s26 = sld [smem:[#allocation10_spill]]  ;;  %s2645_s27 = sld [smem:[#allocation12_spill]] }
 0xa3f   : > { %s2646_s28 = sld [smem:[#allocation14_spill]]  ;;  %s2647_s29 = sld [smem:[#allocation16_spill]] }
 0xa40   : > { %s2648_s21 = smov %s1909_s22  ;;  %28 = sbr.rel (!%p26_p3) target bundleno = 13 (0xd), region = 142 }
 0xa41   : > { %s2649_s22 = smov %s2640_s24 }
 0xa43   : > { %s2650_s24 = smov %s2642_s17 }
 0xa47   :  { %1517 = vsyncpa [#allocation4], 1 }
 0xa48   :  { %1519 = vsyncpa [#allocation4 + $0x1], 1 }

</bundles_post_ra>
